<compile_context>
chip_gen: v6e
topology: v6e:2x2x1
jax: 0.10.0
libtpu: 0.0.40
codegen_flags: <defaults>
</compile_context>

<pallas_src>
import math
from functools import partial

import jax
import jax.numpy as jnp
from jax.experimental import pallas as pl
from jax.experimental.pallas import tpu as pltpu


# ----------------------------------------------------------------------------
# llama3 rope init (deterministic, mirrors transformers' ROPE_INIT_FUNCTIONS)
# ----------------------------------------------------------------------------
def llama3_inv_freq(head_dim, rope_theta, rope_scaling):
    inv_freq = 1.0 / (
        rope_theta ** (jnp.arange(0, head_dim, 2, dtype=jnp.float32) / head_dim)
    )
    factor = rope_scaling["factor"]
    low_freq_factor = rope_scaling["low_freq_factor"]
    high_freq_factor = rope_scaling["high_freq_factor"]
    old_context_len = rope_scaling["original_max_position_embeddings"]

    low_freq_wavelen = old_context_len / low_freq_factor
    high_freq_wavelen = old_context_len / high_freq_factor
    wavelen = 2.0 * math.pi / inv_freq

    inv_freq_llama = jnp.where(wavelen > low_freq_wavelen, inv_freq / factor, inv_freq)
    smooth = (old_context_len / wavelen - low_freq_factor) / (
        high_freq_factor - low_freq_factor
    )
    smoothed = (1.0 - smooth) / factor * inv_freq + smooth * inv_freq
    is_medium = (wavelen >= high_freq_wavelen) & (wavelen <= low_freq_wavelen)
    inv_freq_llama = jnp.where(is_medium, smoothed, inv_freq_llama)
    attention_scaling = 1.0  # rope_type == 'llama3' -> attention_factor = 1.0
    return inv_freq_llama, attention_scaling


def _round_up(n, m):
    return ((n + m - 1) // m) * m


# ----------------------------------------------------------------------------
# Pallas kernel: rotary application on a (tile_rows, D) block of rows
# ----------------------------------------------------------------------------
def _rope_kernel(pos_ref, invf_ref, x_ref, o_ref, *, attn_scale, half):
    # pos_ref:  (tile, 1)  f32  per-row positions (token position, repeated per head)
    # invf_ref: (1, D)     f32  signed inverse frequencies: [-inv_freq | +inv_freq]
    # x_ref:    (tile, D)       rows (token*head folded)
    pos = pos_ref[...]                          # (tile, 1)
    invf = invf_ref[...]                        # (1, D)
    theta = pos * invf                          # (tile, D) broadcast outer product
    cos = jnp.cos(theta)                        # [ cos | cos ]
    sin = jnp.sin(theta)                        # [ -sin | +sin ]
    if attn_scale != 1.0:
        cos = cos * attn_scale
        sin = sin * attn_scale

    x = x_ref[...].astype(jnp.float32)          # (tile, D)
    x_swap = pltpu.roll(x, shift=half, axis=1)  # [ x2 | x1 ]  (XLU slot, ~free)
    # [x1*cos - x2*sin | x2*cos + x1*sin]  -- non-interleaved (flash-attn) rotary
    o_ref[...] = (x * cos + x_swap * sin).astype(o_ref.dtype)


# ----------------------------------------------------------------------------
# Wrapper == RotaryEmbedding.forward
# ----------------------------------------------------------------------------
def rotary_embedding_forward(
    x,
    cu_seqlens,
    start=0,
    stride=1,
    *,
    rope_theta=500000.0,
    rope_scaling=None,
    tile_rows=512,   # rows per grid step over the folded (T*H) axis; 256-512 is
                     # good on v5e, 512-1024 on v6e, can go larger on v7x
):
    if rope_scaling is None:
        rope_scaling = {
            "factor": 8.0,
            "high_freq_factor": 4.0,
            "low_freq_factor": 1.0,
            "original_max_position_embeddings": 8192,
            "rope_type": "llama3",
        }
    T, H, D = x.shape
    assert D % 2 == 0

    inv_freq, attn_scale = llama3_inv_freq(D, rope_theta, rope_scaling)
    # sign-folded, lane-dense (1, D) inv_freq: sin picks up the -/+ automatically
    invf_signed = jnp.concatenate([-inv_freq, inv_freq])[None, :]

    # Glue: per-token local position within its own sequence (varlen packing),
    # then the module's position schedule start + local*stride.
    # TODO(synk): positions could be derived in-kernel from scalar-prefetched
    # cu_seqlens to avoid this tiny (N x 4B) side input; negligible vs x traffic.
    tok = jnp.arange(T, dtype=jnp.int32)
    seq_id = jnp.searchsorted(cu_seqlens, tok, side="right") - 1
    local = tok - cu_seqlens[seq_id]
    pos = (start + local * stride).astype(jnp.float32)   # exact up to 2^24
    pos_rows = jnp.repeat(pos, H)[:, None]                # (T*H, 1)

    # Fold heads into the row axis -> dense (rows, 128) lane layout.
    N = T * H
    x2d = x.reshape(N, D)

    tile = min(tile_rows, _round_up(N, 8))    # multiple of 8 (sublane)
    n_pad = _round_up(N, tile)
    if n_pad != N:
        x2d = jnp.pad(x2d, ((0, n_pad - N), (0, 0)))
        pos_rows = jnp.pad(pos_rows, ((0, n_pad - N), (0, 0)))

    grid = (n_pad // tile,)
    out2d = pl.pallas_call(
        partial(_rope_kernel, attn_scale=attn_scale, half=D // 2),
        out_shape=jax.ShapeDtypeStruct((n_pad, D), x.dtype),
        grid_spec=pltpu.PrefetchScalarGridSpec(
            num_scalar_prefetch=0,
            grid=grid,
            in_specs=[
                pl.BlockSpec((tile, 1), lambda i: (i, 0)),
                pl.BlockSpec((1, D), lambda i: (0, 0)),      # resident
                pl.BlockSpec((tile, D), lambda i: (i, 0)),
            ],
            out_specs=pl.BlockSpec((tile, D), lambda i: (i, 0)),
        ),
        compiler_params=pltpu.CompilerParams(dimension_semantics=("parallel",)),
    )(pos_rows, invf_signed, x2d)

    return out2d[:N].reshape(T, H, D)


# ----------------------------------------------------------------------------
# Pure-JAX reference (mirrors the PyTorch forward exactly)
# ----------------------------------------------------------------------------
def _reference(x, cu_seqlens, start=0, stride=1):
    T, H, D = x.shape
    inv_freq, attn_scale = llama3_inv_freq(
        D,
        500000.0,
        {
            "factor": 8.0,
            "high_freq_factor": 4.0,
            "low_freq_factor": 1.0,
            "original_max_position_embeddings": 8192,
        },
    )
    tok = jnp.arange(T, dtype=jnp.int32)
    seq_id = jnp.searchsorted(cu_seqlens, tok, side="right") - 1
    local = tok - cu_seqlens[seq_id]
    pos = (start + local * stride).astype(jnp.float32)
    theta = pos[:, None] * inv_freq[None, :]          # (T, D//2)
    cos = (jnp.cos(theta) * attn_scale)[:, None, :]
    sin = (jnp.sin(theta) * attn_scale)[:, None, :]
    xf = x.astype(jnp.float32)
    x1, x2 = xf[..., : D // 2], xf[..., D // 2 :]
    out = jnp.concatenate([x1 * cos - x2 * sin, x1 * sin + x2 * cos], axis=-1)
    return out.astype(x.dtype)


if __name__ == "__main__":
    key = jax.random.PRNGKey(0)
    total_seqlen, num_heads, head_dim = 48, 2, 128   # head_dim matches RopeConfig default
    x = jax.random.normal(key, (total_seqlen, num_heads, head_dim), dtype=jnp.float32)
    cu_seqlens = jnp.array([0, 10, 27, 48], dtype=jnp.int32)  # three packed seqs

    ref = _reference(x, cu_seqlens, start=0, stride=1)

    # Default (large) tile — single grid step for this small demo.
    out = rotary_embedding_forward(x, cu_seqlens, start=0, stride=1)
    out = jax.block_until_ready(out)
    assert out.shape == x.shape and out.dtype == x.dtype
    assert jnp.allclose(out, ref, atol=1e-4, rtol=1e-4)

    # Small tile to exercise the multi-step tiled/padded path (T*H=96, tile=32).
    out_tiled = rotary_embedding_forward(x, cu_seqlens, start=2, stride=3, tile_rows=32)
    out_tiled = jax.block_until_ready(out_tiled)
    ref_tiled = _reference(x, cu_seqlens, start=2, stride=3)
    assert jnp.allclose(out_tiled, ref_tiled, atol=1e-4, rtol=1e-4)

    # bf16 I/O path (HBM traffic halves; math stays f32 in-kernel).
    x_bf16 = x.astype(jnp.bfloat16)
    out_bf16 = jax.block_until_ready(rotary_embedding_forward(x_bf16, cu_seqlens))
    assert out_bf16.dtype == jnp.bfloat16
    assert jnp.allclose(
        out_bf16.astype(jnp.float32),
        _reference(x_bf16, cu_seqlens).astype(jnp.float32),
        atol=5e-2,
        rtol=5e-2,
    )

    print("KERNEL_OK")
</pallas_src>

<mosaic_0001>
module attributes {stable_mosaic.version = 11 : i64} {
  func.func @_rope_kernel(%arg0: i32, %arg1: memref<96x1xf32, #tpu.memory_space<vmem>>, %arg2: memref<1x128xf32, #tpu.memory_space<vmem>>, %arg3: memref<96x128xf32, #tpu.memory_space<vmem>>, %arg4: memref<96x128xf32, #tpu.memory_space<vmem>>) attributes {dimension_semantics = [#tpu.dimension_semantics<parallel>], iteration_bounds = array<i64: 1>, scalar_prefetch = 0 : i64, scratch_operands = 0 : i64, tpu.core_type = #tpu.core_type<tc>, window_params = [{transform_indices = @transform_0, window_bounds = array<i64: 96, 1>}, {pipeline_mode = #tpu.pipeline_mode<synchronous>, transform_indices = @transform_1, window_bounds = array<i64: 1, 128>}, {transform_indices = @transform_2, window_bounds = array<i64: 96, 128>}, {transform_indices = @transform_3, window_bounds = array<i64: 96, 128>}]} {
    %c0 = arith.constant 0 : index
    %c0_0 = arith.constant 0 : index
    %0 = vector.load %arg1[%c0, %c0_0] : memref<96x1xf32, #tpu.memory_space<vmem>>, vector<96x1xf32>
    %c0_1 = arith.constant 0 : index
    %c0_2 = arith.constant 0 : index
    %1 = vector.load %arg2[%c0_1, %c0_2] : memref<1x128xf32, #tpu.memory_space<vmem>>, vector<1x128xf32>
    %2 = vector.broadcast %0 : vector<96x1xf32> to vector<96x128xf32>
    %3 = vector.broadcast %1 : vector<1x128xf32> to vector<96x128xf32>
    %4 = arith.mulf %2, %3 : vector<96x128xf32>
    %5 = math.cos %4 : vector<96x128xf32>
    %6 = math.sin %4 : vector<96x128xf32>
    %c0_3 = arith.constant 0 : index
    %c0_4 = arith.constant 0 : index
    %7 = vector.load %arg3[%c0_3, %c0_4] : memref<96x128xf32, #tpu.memory_space<vmem>>, vector<96x128xf32>
    %c64_i32 = arith.constant 64 : i32
    %8 = tpu.dynamic_rotate %7 by %c64_i32 dim 1 : vector<96x128xf32>, i32 -> vector<96x128xf32>
    %9 = arith.mulf %7, %5 : vector<96x128xf32>
    %10 = arith.mulf %8, %6 : vector<96x128xf32>
    %11 = arith.addf %9, %10 : vector<96x128xf32>
    %c0_5 = arith.constant 0 : index
    %c0_6 = arith.constant 0 : index
    %12 = vector.load %arg4[%c0_5, %c0_6] : memref<96x128xf32, #tpu.memory_space<vmem>>, vector<96x128xf32>
    tpu.vector_store %arg4[%c0_5, %c0_6], %11 {strides = array<i32>} : memref<96x128xf32, #tpu.memory_space<vmem>>, vector<96x128xf32>,
    return
  }
  func.func @transform_0(%arg0: i32) -> (i32, i32) {
    %c0_i32 = arith.constant 0 : i32
    %c0_i32_0 = arith.constant 0 : i32
    return %arg0, %c0_i32 : i32, i32
  }
  func.func @transform_1(%arg0: i32) -> (i32, i32) {
    %c0_i32 = arith.constant 0 : i32
    %c0_i32_0 = arith.constant 0 : i32
    %c0_i32_1 = arith.constant 0 : i32
    return %c0_i32, %c0_i32_0 : i32, i32
  }
  func.func @transform_2(%arg0: i32) -> (i32, i32) {
    %c0_i32 = arith.constant 0 : i32
    %c0_i32_0 = arith.constant 0 : i32
    return %arg0, %c0_i32 : i32, i32
  }
  func.func @transform_3(%arg0: i32) -> (i32, i32) {
    %c0_i32 = arith.constant 0 : i32
    %c0_i32_0 = arith.constant 0 : i32
    return %arg0, %c0_i32 : i32, i32
  }
}

</mosaic_0001>

<bundles_post_ra>
// kernel: tpu_custom_call.1
= control target key start
LH: loop header
LB: loop body
LE: loop exit
PB: predicated region body
PF: predicated region fallthrough
CT: control target
= control target key end

     0   :  { %v2931_v2 = vmov 0   ;;  %s4152_s0 = inlined_call_operand.vmem [shape: f32[96,1], index: 0, kind: input, shape index: {}]   ;;  %s4153_s1 = inlined_call_operand.vmem [shape: f32[1,128], index: 1, kind: input, shape index: {}]   ;;  %s4154_s2 = inlined_call_operand.vmem [shape: f32[96,128], index: 2, kind: input, shape index: {}]   ;;  %s4155_s3 = inlined_call_operand.hbm [shape: f32[96,128], index: 3, kind: output, shape index: {}]  }
   0x1   :  { %v17_v0 = vld [vmem:[%s4152_s0 + $0x10] sm:$0xff]  ;;  %v15_v1 = vld [vmem:[%s4152_s0] sm:$0xff]  ;;  %2847 = vset.pattern.permute.xlu1 %v2931_v2  ;;  %2846 = vset.pattern.permute.xlu0 %v2931_v2  ;;  %v18_v3 = vld [vmem:[%s4152_s0 + $0x18] sm:$0xff] }
   0x2   :  { %40 = vperm.xlu1 %2847, %v17_v0   ;;  %30 = vperm.xlu0 %2846, %v15_v1   ;;  %v16_v4 = vld [vmem:[%s4152_s0 + $0x8] sm:$0xff]  ;;  %v19_v6 = vld [vmem:[%s4152_s0 + $0x20] sm:$0xff] }
   0x3   :  { %v20_v5 = vld [vmem:[%s4152_s0 + $0x28] sm:$0xff] }
   0x6   :  { %45 = vperm.xlu1 %2847, %v18_v3   ;;  %35 = vperm.xlu0 %2846, %v16_v4  }
   0x7   :  { %8 = vsyncpa [#allocation3], 0  ;;  %v22_v7 = vld [vmem:[%s4152_s0 + $0x38] sm:$0xff]  ;;  %v21_v8 = vld [vmem:[%s4152_s0 + $0x30] sm:$0xff]  ;;  %s2932_s13 = smov 64   ;;  %s2939_s30 = smov [#allocation2]  }
   0x8   :  { %v24_v9 = vld [vmem:[%s4152_s0 + $0x48] sm:$0xff]  ;;  %v23_v10 = vld [vmem:[%s4152_s0 + $0x40] sm:$0xff]  ;;  %v26_v11 = vld [vmem:[%s4152_s0 + $0x58] sm:$0xff]  ;;  %v4175_v0 = vmov 683565275   ;;  %s2679_s4 = sshll.u32 %s2939_s30, 4  ;;  %s2680_s4 = int_to_ptr.vmem [resolvable:$true] %s2679_s4 }
   0x9   :  { %v25_v12 = vld [vmem:[%s4152_s0 + $0x50] sm:$0xff]  ;;  %v2590_v13 = vld [vmem:[%s4154_s2] sm:$0xff]  ;;  %v2591_v14 = vld [vmem:[%s4154_s2 + $0x8] sm:$0xff]  ;;  %v4173_v2 = vmov 2475754826   ;;  %s2909_s7 = scalar_lea.vmem %s2680_s4, 1536  ;;  %p2914_p1 = scmp.lt.s32.totalorder %s2680_s4, %s2680_s4 }
   0xa   :  { %55 = vperm.xlu1 %2847, %v20_v5   ;;  %50 = vperm.xlu0 %2846, %v19_v6   ;;  %v2592_v15 = vld [vmem:[%s4154_s2 + $0x10] sm:$0xff]  ;;  %v2593_v16 = vld [vmem:[%s4154_s2 + $0x18] sm:$0xff]  ;;  %v2595_v17 = vld [vmem:[%s4154_s2 + $0x28] sm:$0xff]  ;;  %v4169_v5 = vmov 2131351028   ;;  %p2910_p0 = scmp.ne.s32.totalorder %s2680_s4, %s2909_s7  ;;  %p2915_p2 = scmp.lt.s32.totalorder %s2909_s7, %s2909_s7 }
   0xb   :  { %v2594_v18 = vld [vmem:[%s4154_s2 + $0x20] sm:$0xff]  ;;  %v2597_v19 = vld [vmem:[%s4154_s2 + $0x38] sm:$0xff]  ;;  %v2596_v20 = vld [vmem:[%s4154_s2 + $0x30] sm:$0xff] }
   0xc   :  { %v2599_v21 = vld [vmem:[%s4154_s2 + $0x48] sm:$0xff]  ;;  %v2598_v22 = vld [vmem:[%s4154_s2 + $0x40] sm:$0xff]  ;;  %v2601_v23 = vld [vmem:[%s4154_s2 + $0x58] sm:$0xff]  ;;  %p2916_p3 = por %p2915_p2, %p2914_p1 }
   0xd   :  { %v2600_v24 = vld [vmem:[%s4154_s2 + $0x50] sm:$0xff]  ;;  %v3037_v25 = vld [vmem:[%s4153_s1] ss:$0 sm:$0xff] }
   0xe   :  { %65 = vperm.xlu1 %2847, %v22_v7   ;;  %60 = vperm.xlu0 %2846, %v21_v8   ;;  %v4171_v7 = vmov 2102212464   ;;  %p2917_p4 = pnand %p2916_p3, %p2910_p0 }
  0x12   :  { %75 = vperm.xlu1 %2847, %v24_v9   ;;  %70 = vperm.xlu0 %2846, %v23_v10   ;;  %v4166_v9 = vmov 920167782  }
  0x16   :  { %85 = vperm.xlu1 %2847, %v26_v11   ;;  %80 = vperm.xlu0 %2846, %v25_v12  }
  0x1a   :  { %2602 = vrot.lane.b32.xlu0 %v2590_v13, %s2932_s13  ;;  %2604 = vrot.lane.b32.xlu1 %v2591_v14, %s2932_s13 }
  0x1e   :  { %2606 = vrot.lane.b32.xlu0 %v2592_v15, %s2932_s13  ;;  %2608 = vrot.lane.b32.xlu1 %v2593_v16, %s2932_s13  ;;  %v4164_v16 = vmov 1326507024  }
  0x22   :  { %2612 = vrot.lane.b32.xlu1 %v2595_v17, %s2932_s13  ;;  %2610 = vrot.lane.b32.xlu0 %v2594_v18, %s2932_s13 }
  0x26   :  { %2616 = vrot.lane.b32.xlu1 %v2597_v19, %s2932_s13  ;;  %2614 = vrot.lane.b32.xlu0 %v2596_v20, %s2932_s13 }
  0x2a   :  { %2620 = vrot.lane.b32.xlu1 %v2599_v21, %s2932_s13  ;;  %2618 = vrot.lane.b32.xlu0 %v2598_v22, %s2932_s13 }
  0x2e   :  { %2624 = vrot.lane.b32.xlu1 %v2601_v23, %s2932_s13  ;;  %2622 = vrot.lane.b32.xlu0 %v2600_v24, %s2932_s13 }
  0x7d   :  { %v41_v26 = vpop.permute.xlu1 %40  ;;  %v31_v27 = vpop.permute.xlu0 %30 }
  0x7e   :  { %v3040_v28 = vmul.f32 %v3037_v25, %v41_v26  ;;  %v3043_v29 = vmul.f32 %v3037_v25, %v31_v27 }
  0x80   :  { %v4160_v30 = vand.u32 2147483647, %v3040_v28  ;;  %v315_v31 = vand.u32 2139095040, %v3040_v28  ;;  %v4163_v32 = vand.u32 2147483647, %v3043_v29  ;;  %v109_v33 = vand.u32 2139095040, %v3043_v29 }
  0x81   :  { %v46_v34 = vpop.permute.xlu1 %45  ;;  %v36_v42 = vpop.permute.xlu0 %35 }
  0x82   :  { %v316_v35 = vshrl.u32 %v315_v31, 23  ;;  %v319_v36 = vand.u32 8388607, %v4160_v30  ;;  %v113_v37 = vand.u32 8388607, %v4163_v32  ;;  %v3054_v38 = vmul.f32 %v3037_v25, %v46_v34 }
  0x83   :  { %v110_v39 = vshrl.u32 %v109_v33, 23  ;;  %v3063_v51 = vmul.f32 %v3037_v25, %v36_v42 }
  0x84   :  { %v2699_v40 = vadd.s32 4294967169, %v316_v35  ;;  %v4159_v41 = vand.u32 2147483647, %v3054_v38  ;;  %v320_v43 = vor.u32 8388608, %v319_v36  ;;  %v418_v45 = vand.u32 2139095040, %v3054_v38 }
  0x85   :  { %v2691_v44 = vadd.s32 4294967169, %v110_v39  ;;  %v114_v47 = vor.u32 8388608, %v113_v37  ;;  %v212_v62 = vand.u32 2139095040, %v3063_v51 }
  0x86   :  { %v322_v46 = vadd.s32 1, %v2699_v40  ;;  %v419_v49 = vshrl.u32 %v418_v45, 23  ;;  %v3060_v50 = vand.u32 8388607, %v4159_v41  ;;  %v3065_v53 = vshll.u32 %v320_v43, 8 }
  0x87   :  { %v116_v48 = vadd.s32 1, %v2691_v44  ;;  %v3067_v58 = vshll.u32 %v114_v47, 8 }
  0x88   :  { %vm323_vm0 = vcmp.gt.s32.totalorder %v322_v46, 0  ;;  %v2703_v54 = vadd.s32 4294967169, %v419_v49  ;;  %v423_v61 = vor.u32 8388608, %v3060_v50 }
  0x89   :  { %v324_v52 = vsel %vm323_vm0, %v322_v46, 0  ;;  %vm117_vm1 = vcmp.gt.s32.totalorder %v116_v48, 0 }
  0x8a   :  { %v325_v55 = vshrl.u32 %v324_v52, 5  ;;  %v326_v56 = vand.u32 31, %v324_v52  ;;  %v118_v57 = vsel %vm117_vm1, %v116_v48, 0  ;;  %v3075_v4 = vadd.s32 1, %v2703_v54 }
  0x8b   :  { %v3069_v59 = vshrl.u32 %v118_v57, 5  ;;  %v120_v60 = vand.u32 31, %v118_v57 }
  0x8c   :  { %v327_v63 = vsub.s32 32, %v326_v56  ;;  %v329_v1 = vshll.u32 %v4175_v0, %v326_v56  ;;  %v332_v3 = vshll.u32 %v4173_v2, %v326_v56  ;;  %v335_v6 = vshll.u32 %v4169_v5, %v326_v56 }
  0x8d   :  { %v338_v8 = vshll.u32 %v4171_v7, %v326_v56  ;;  %v341_v10 = vshll.u32 %v4166_v9, %v326_v56  ;;  %vm344_vm2 = vcmp.lt.s32.totalorder %v325_v55, 1  ;;  %vm345_vm3 = vcmp.lt.s32.totalorder %v325_v55, 2 }
  0x8e   :  { %v330_v11 = vshrl.u32 %v4173_v2, %v327_v63  ;;  %v333_v12 = vshrl.u32 %v4169_v5, %v327_v63  ;;  %v336_v13 = vshrl.u32 %v4171_v7, %v327_v63  ;;  %v328_v14 = vshrl.u32 %v4175_v0, %v327_v63 }
  0x8f   :  { %v339_v15 = vshrl.u32 %v4166_v9, %v327_v63  ;;  %v342_v17 = vshrl.u32 %v4164_v16, %v327_v63  ;;  %vm346_vm4 = vcmp.lt.s32.totalorder %v325_v55, 3  ;;  %v121_v21 = vsub.s32 32, %v120_v60 }
  0x90   :  { %v331_v18 = vor.u32 %v330_v11, %v329_v1  ;;  %v334_v19 = vor.u32 %v333_v12, %v332_v3  ;;  %v337_v20 = vor.u32 %v336_v13, %v335_v6  ;;  %vm347_vm5 = vcmp.lt.s32.totalorder %v325_v55, 4 }
  0x91   :  { %v340_v22 = vor.u32 %v339_v15, %v338_v8  ;;  %v343_v23 = vor.u32 %v342_v17, %v341_v10  ;;  %v123_v24 = vshll.u32 %v4175_v0, %v120_v60  ;;  %v126_v37 = vshll.u32 %v4173_v2, %v120_v60 }
  0x92   :  { %v348_v26 = vsel %vm344_vm2, %v328_v14, %v331_v18  ;;  %v349_v27 = vsel %vm347_vm5, %v337_v20, 2102212464  ;;  %v352_v31 = vsel %vm344_vm2, %v331_v18, %v334_v19  ;;  %v356_v33 = vsel %vm344_vm2, %v334_v19, %v337_v20 }
  0x93   :  { %v350_v34 = vsel %vm346_vm4, %v334_v19, %v349_v27  ;;  %v353_v35 = vsel %vm347_vm5, %v340_v22, 920167782  ;;  %v357_v36 = vsel %vm347_vm5, %v343_v23, 1326507024  ;;  %v122_v42 = vshrl.u32 %v4175_v0, %v121_v21 }
  0x94   :  { %v354_v39 = vsel %vm346_vm4, %v337_v20, %v353_v35  ;;  %v358_v40 = vsel %vm346_vm4, %v340_v22, %v357_v36  ;;  %v124_v43 = vshrl.u32 %v4173_v2, %v121_v21  ;;  %v351_v44 = vsel %vm345_vm3, %v348_v26, %v350_v34 }
  0x95   :  { %v355_v45 = vsel %vm345_vm3, %v352_v31, %v354_v39  ;;  %v359_v46 = vsel %vm345_vm3, %v356_v33, %v358_v40  ;;  %v127_v47 = vshrl.u32 %v4169_v5, %v121_v21  ;;  %v129_v63 = vshll.u32 %v4169_v5, %v120_v60 }
  0x96   :  { %v3101_v48 = vmul.u32.u64.low %v3065_v53, %v359_v46  ;;  %v3102_v49 = vmul.u32.u64.high %v3065_v53, %v359_v46, %v3101_v48  ;;  %v3105_v52 = vmul.u32.u64.low %v3065_v53, %v355_v45  ;;  %v3106_v54 = vmul.u32.u64.high %v3065_v53, %v355_v45, %v3105_v52 }
  0x97   :  { %v125_v56 = vor.u32 %v124_v43, %v123_v24  ;;  %v128_v57 = vor.u32 %v127_v47, %v126_v37  ;;  %v130_v1 = vshrl.u32 %v4171_v7, %v121_v21  ;;  %v367_v55 = vmul.u32 %v3065_v53, %v351_v44 }
  0x98   :  { %v132_v3 = vshll.u32 %v4171_v7, %v120_v60  ;;  %v133_v6 = vshrl.u32 %v4166_v9, %v121_v21  ;;  %v136_v8 = vshrl.u32 %v4164_v16, %v121_v21  ;;  %v135_v11 = vshll.u32 %v4166_v9, %v120_v60 }
  0x99   :  { %v131_v10 = vor.u32 %v130_v1, %v129_v63  ;;  %vm138_vm6 = vcmp.lt.s32.totalorder %v3069_v59, 1  ;;  %vm139_vm7 = vcmp.lt.s32.totalorder %v3069_v59, 2  ;;  %vm369_vm8 = vc.u32 %v3102_v49, %v3105_v52 }
  0x9a   :  { %v370_v12 = vadd.s32 1, %v3106_v54  ;;  %v134_v13 = vor.u32 %v133_v6, %v132_v3  ;;  %vm140_vm9 = vcmp.lt.s32.totalorder %v3069_v59, 3  ;;  %v137_v53 = vor.u32 %v136_v8, %v135_v11 }
  0x9b   :  { %vm141_vm10 = vcmp.lt.s32.totalorder %v3069_v59, 4  ;;  %v142_v14 = vsel %vm138_vm6, %v122_v42, %v125_v56  ;;  %v146_v15 = vsel %vm138_vm6, %v125_v56, %v128_v57  ;;  %v150_v19 = vsel %vm138_vm6, %v128_v57, %v131_v10 }
  0x9c   :  { %v371_v17 = vsel %vm369_vm8, %v370_v12, %v3106_v54  ;;  %v143_v60 = vsel %vm141_vm10, %v131_v10, 2102212464  ;;  %v147_v18 = vsel %vm141_vm10, %v134_v13, 920167782  ;;  %v151_v23 = vsel %vm141_vm10, %v137_v53, 1326507024 }
  0x9d   :  { %v372_v20 = vadd.s32 %v371_v17, %v367_v55  ;;  %v144_v21 = vsel %vm140_vm9, %v128_v57, %v143_v60  ;;  %v148_v22 = vsel %vm140_vm9, %v131_v10, %v147_v18  ;;  %v152_v26 = vsel %vm140_vm9, %v134_v13, %v151_v23 }
  0x9e   :  { %v149_v24 = vsel %vm139_vm7, %v146_v15, %v148_v22  ;;  %vm426_vm11 = vcmp.gt.s32.totalorder %v3075_v4, 0  ;;  %v213_v27 = vshrl.u32 %v212_v62, 23  ;;  %v153_v33 = vsel %vm139_vm7, %v150_v19, %v152_v26 }
  0x9f   :  { %v373_v31 = vadd.s32 536870912, %v372_v20  ;;  %v3132_v34 = vmul.u32.u64.low %v3067_v58, %v149_v24  ;;  %v3133_v35 = vmul.u32.u64.high %v3067_v58, %v149_v24, %v3132_v34  ;;  %v145_v36 = vsel %vm139_vm7, %v142_v14, %v144_v21 }
  0xa0   :  { %v3139_v37 = vmul.u32.u64.low %v3067_v58, %v153_v33  ;;  %v3140_v39 = vmul.u32.u64.high %v3067_v58, %v153_v33, %v3139_v37  ;;  %v427_v40 = vsel %vm426_vm11, %v3075_v4, 0  ;;  %v3147_v43 = vshll.u32 %v423_v61, 8 }
  0xa1   :  { %v3143_v42 = vshrl.u32 %v373_v31, 30  ;;  %v429_v62 = vand.u32 31, %v427_v40  ;;  %v4162_v44 = vand.u32 2147483647, %v3063_v51  ;;  %v2695_v45 = vadd.s32 4294967169, %v213_v27 }
  0xa2   :  { %v161_v59 = vmul.u32 %v3067_v58, %v145_v36  ;;  %v164_v47 = vadd.s32 1, %v3133_v35  ;;  %vm163_vm12 = vc.u32 %v3140_v39, %v3132_v34  ;;  %v428_v4 = vshrl.u32 %v427_v40, 5 }
  0xa3   :  { %v375_v46 = vshll.u32 %v3143_v42, 30  ;;  %v430_v48 = vsub.s32 32, %v429_v62  ;;  %v432_v54 = vshll.u32 %v4175_v0, %v429_v62  ;;  %v435_v50 = vshll.u32 %v4173_v2, %v429_v62 }
  0xa4   :  { %v165_v56 = vsel %vm163_vm12, %v164_v47, %v3133_v35  ;;  %v438_v63 = vshll.u32 %v4169_v5, %v429_v62  ;;  %v441_v3 = vshll.u32 %v4171_v7, %v429_v62  ;;  %v444_v11 = vshll.u32 %v4166_v9, %v429_v62 }
  0xa5   :  { %v3157_v61 = vsub.s32 %v372_v20, %v375_v46  ;;  %v433_v57 = vshrl.u32 %v4173_v2, %v430_v48  ;;  %v166_v58 = vadd.s32 %v165_v56, %v161_v59  ;;  %v436_v1 = vshrl.u32 %v4169_v5, %v430_v48 }
  0xa6   :  { %v439_v55 = vshrl.u32 %v4171_v7, %v430_v48  ;;  %v442_v10 = vshrl.u32 %v4166_v9, %v430_v48  ;;  %v445_v14 = vshrl.u32 %v4164_v16, %v430_v48  ;;  %v431_v17 = vshrl.u32 %v4175_v0, %v430_v48 }
  0xa7   :  { %v378_v6 = vsub.s32 0, %v3157_v61  ;;  %v434_v8 = vor.u32 %v433_v57, %v432_v54  ;;  %v167_v12 = vadd.s32 536870912, %v166_v58  ;;  %v437_v13 = vor.u32 %v436_v1, %v435_v50 }
  0xa8   :  { %v440_v53 = vor.u32 %v439_v55, %v438_v63  ;;  %v443_v60 = vor.u32 %v442_v10, %v441_v3  ;;  %v219_v18 = vadd.s32 1, %v2695_v45  ;;  %v446_v20 = vor.u32 %v445_v14, %v444_v11 }
  0xa9   :  { %v2700_v15 = vmin.u32 %v378_v6, %v3157_v61  ;;  %v3171_v19 = vshrl.u32 %v167_v12, 30  ;;  %vm447_vm13 = vcmp.lt.s32.totalorder %v428_v4, 1  ;;  %vm450_vm14 = vcmp.lt.s32.totalorder %v428_v4, 4 }
  0xaa   :  { %vm448_vm15 = vcmp.lt.s32.totalorder %v428_v4, 2  ;;  %v452_v22 = vsel %vm450_vm14, %v440_v53, 2102212464  ;;  %v455_v23 = vsel %vm447_vm13, %v434_v8, %v437_v13  ;;  %vm449_vm0 = vcmp.lt.s32.totalorder %v428_v4, 3 }
  0xab   :  { %v380_v21 = vclz %v2700_v15  ;;  %v169_v24 = vshll.u32 %v3171_v19, 30  ;;  %v456_v26 = vsel %vm450_vm14, %v443_v60, 920167782  ;;  %v459_v27 = vsel %vm447_vm13, %v437_v13, %v440_v53 }
  0xac   :  { %v451_v33 = vsel %vm447_vm13, %v431_v17, %v434_v8  ;;  %v457_v35 = vsel %vm449_vm0, %v440_v53, %v456_v26  ;;  %v460_v36 = vsel %vm450_vm14, %v446_v20, 1326507024  ;;  %v453_v40 = vsel %vm449_vm0, %v437_v13, %v452_v22 }
  0xad   :  { %v2701_v31 = vadd.s32 4294967294, %v380_v21  ;;  %v3174_v37 = vsub.s32 %v166_v58, %v169_v24  ;;  %v458_v62 = vsel %vm448_vm15, %v455_v23, %v457_v35  ;;  %v461_v45 = vsel %vm449_vm0, %v443_v60, %v460_v36  ;;  %v56_v58 = vpop.permute.xlu1 %55 }
  0xae   :  { %v462_v46 = vsel %vm448_vm15, %v459_v27, %v461_v45  ;;  %v3179_v59 = vmul.u32.u64.low %v3147_v43, %v458_v62  ;;  %v3180_v47 = vmul.u32.u64.high %v3147_v43, %v458_v62, %v3179_v59  ;;  %v454_v57 = vsel %vm448_vm15, %v451_v33, %v453_v40 }
  0xaf   :  { %vm2702_vm1 = vcmp.lt.s32.totalorder %v2701_v31, 0  ;;  %v172_v54 = vsub.s32 0, %v3174_v37  ;;  %v3185_v50 = vmul.u32.u64.low %v3147_v43, %v462_v46  ;;  %v3186_v56 = vmul.u32.u64.high %v3147_v43, %v462_v46, %v3185_v50 }
  0xb0   :  { %v383_v48 = vsel %vm2702_vm1, 0, %v2701_v31  ;;  %vm220_vm2 = vcmp.gt.s32.totalorder %v219_v18, 0  ;;  %v473_v3 = vadd.s32 1, %v3180_v47  ;;  %v470_v6 = vmul.u32 %v3147_v43, %v454_v57 }
  0xb1   :  { %v221_v63 = vsel %vm220_vm2, %v219_v18, 0  ;;  %v388_v1 = vsub.s32 4294967266, %v383_v48  ;;  %v2692_v55 = vmin.u32 %v172_v54, %v3174_v37  ;;  %vm472_vm3 = vc.u32 %v3186_v56, %v3179_v59 }
  0xb2   :  { %v216_v8 = vand.u32 8388607, %v4162_v44  ;;  %v223_v10 = vand.u32 31, %v221_v63  ;;  %v474_v4 = vsel %vm472_vm3, %v473_v3, %v3180_v47  ;;  %v3198_v11 = vmul.f32 %v3037_v25, %v56_v58 }
  0xb3   :  { %v475_v12 = vadd.s32 %v474_v4, %v470_v6  ;;  %v384_v53 = vsub.s32 32, %v383_v48  ;;  %v389_v14 = vadd.s32 127, %v388_v1  ;;  %v174_v15 = vclz %v2692_v55 }
  0xb4   :  { %4193 = vst [vmem:[#allocation5_spill] sm:$0xff] %v3198_v11  ;;  %v224_v13 = vsub.s32 32, %v223_v10  ;;  %v368_v43 = vadd.s32 %v3105_v52, %v3102_v49  ;;  %v217_v60 = vor.u32 8388608, %v216_v8  ;;  %v385_v20 = vshll.u32 %v3157_v61, %v383_v48 }
  0xb5   :  { %v476_v17 = vadd.s32 536870912, %v475_v12  ;;  %v624_v23 = vand.u32 2139095040, %v3198_v11  ;;  %v226_v26 = vshll.u32 %v4175_v0, %v223_v10  ;;  %v229_v27 = vshll.u32 %v4173_v2, %v223_v10 }
  0xb6   :  { %v227_v18 = vshrl.u32 %v4173_v2, %v224_v13  ;;  %v230_v21 = vshrl.u32 %v4169_v5, %v224_v13  ;;  %v233_v22 = vshrl.u32 %v4171_v7, %v224_v13  ;;  %v232_v49 = vshll.u32 %v4169_v5, %v223_v10 }
  0xb7   :  { %v3207_v24 = vshrl.u32 %v476_v17, 30  ;;  %v386_v52 = vshrl.u32 %v368_v43, %v384_v53  ;;  %v390_v31 = vshll.u32 %v389_v14, 23  ;;  %v2693_v33 = vadd.s32 4294967294, %v174_v15 }
  0xb8   :  { %v222_v35 = vshrl.u32 %v221_v63, 5  ;;  %v228_v36 = vor.u32 %v227_v18, %v226_v26  ;;  %v231_v40 = vor.u32 %v230_v21, %v229_v27  ;;  %v234_v62 = vor.u32 %v233_v22, %v232_v49 }
  0xb9   :  { %v478_v61 = vshll.u32 %v3207_v24, 30  ;;  %v235_v45 = vshll.u32 %v4171_v7, %v223_v10  ;;  %v236_v46 = vshrl.u32 %v4166_v9, %v224_v13  ;;  %v238_v47 = vshll.u32 %v4166_v9, %v223_v10 }
  0xba   :  { %v239_v48 = vshrl.u32 %v4164_v16, %v224_v13  ;;  %v257_v50 = vshll.u32 %v217_v60, 8  ;;  %v4158_v57 = vand.u32 2147483647, %v3198_v11  ;;  %v625_v58 = vshrl.u32 %v624_v23, 23 }
  0xbb   :  { %v3217_v54 = vsub.s32 %v475_v12, %v478_v61  ;;  %v387_v63 = vor.u32 %v386_v52, %v385_v20  ;;  %v237_v1 = vor.u32 %v236_v46, %v235_v45  ;;  %vm241_vm4 = vcmp.lt.s32.totalorder %v222_v35, 1 }
  0xbc   :  { %v240_v55 = vor.u32 %v239_v48, %v238_v47  ;;  %v391_v3 = vor.u32 4788187, %v390_v31  ;;  %vm2694_vm5 = vcmp.lt.s32.totalorder %v2693_v33, 0  ;;  %vm244_vm6 = vcmp.lt.s32.totalorder %v222_v35, 4 }
  0xbd   :  { %v481_v6 = vsub.s32 0, %v3217_v54  ;;  %vm243_vm7 = vcmp.lt.s32.totalorder %v222_v35, 3  ;;  %v246_v8 = vsel %vm244_vm6, %v234_v62, 2102212464  ;;  %v249_v10 = vsel %vm241_vm4, %v228_v36, %v231_v40 }
  0xbe   :  { %v250_v4 = vsel %vm244_vm6, %v237_v1, 920167782  ;;  %v225_v53 = vshrl.u32 %v4175_v0, %v224_v13  ;;  %vm242_vm8 = vcmp.lt.s32.totalorder %v222_v35, 2  ;;  %v3224_v15 = vsel %vm2694_vm5, 0, %v2693_v33 }
  0xbf   :  { %v2704_v12 = vmin.u32 %v481_v6, %v3217_v54  ;;  %v251_v14 = vsel %vm243_vm7, %v234_v62, %v250_v4  ;;  %v253_v17 = vsel %vm241_vm4, %v231_v40, %v234_v62  ;;  %v254_v60 = vsel %vm244_vm6, %v240_v55, 1326507024  ;;  %v51_v62 = vpop.permute.xlu0 %50 }
  0xc0   :  { %v252_v43 = vsel %vm242_vm8, %v249_v10, %v251_v14  ;;  %v245_v20 = vsel %vm241_vm4, %v225_v53, %v228_v36  ;;  %v247_v21 = vsel %vm243_vm7, %v231_v40, %v246_v8  ;;  %v255_v22 = vsel %vm243_vm7, %v237_v1, %v254_v60 }
  0xc1   :  { %v483_v18 = vclz %v2704_v12  ;;  %v256_v23 = vsel %vm242_vm8, %v253_v17, %v255_v22  ;;  %v3230_v26 = vmul.u32.u64.low %v257_v50, %v252_v43  ;;  %v3231_v27 = vmul.u32.u64.high %v257_v50, %v252_v43, %v3230_v26 }
  0xc2   :  { %v2711_v13 = vadd.s32 4294967169, %v625_v58  ;;  %v182_v49 = vsub.s32 4294967266, %v3224_v15  ;;  %v3235_v31 = vmul.u32.u64.low %v257_v50, %v256_v23  ;;  %v3236_v33 = vmul.u32.u64.high %v257_v50, %v256_v23, %v3235_v31 }
  0xc3   :  { %v2705_v52 = vadd.s32 4294967294, %v483_v18  ;;  %v248_v61 = vsel %vm242_vm8, %v245_v20, %v247_v21  ;;  %v628_v36 = vand.u32 8388607, %v4158_v57  ;;  %v392_v45 = vand.u32 2147483647, %v391_v3  ;;  %v66_v3 = vpop.permute.xlu1 %65 }
  0xc4   :  { %v631_v40 = vadd.s32 1, %v2711_v13  ;;  %v267_v47 = vadd.s32 1, %v3231_v27  ;;  %v394_v48 = vcvt.s32.f32 %v387_v63  ;;  %v178_v58 = vsub.s32 32, %v3224_v15 }
  0xc5   :  { %vm2706_vm9 = vcmp.lt.s32.totalorder %v2705_v52, 0  ;;  %v3245_v1 = vadd.s32 127, %v182_v49  ;;  %v264_v55 = vmul.u32 %v257_v50, %v248_v61  ;;  %vm266_vm11 = vc.u32 %v3236_v33, %v3230_v26 }
  0xc6   :  { %v3241_v46 = vsel %vm2706_vm9, 0, %v2705_v52  ;;  %vm632_vm10 = vcmp.gt.s32.totalorder %v631_v40, 0  ;;  %v629_v35 = vor.u32 8388608, %v628_v36  ;;  %v3250_v8 = vmul.f32 %v3037_v25, %v51_v62 }
  0xc7   :  { %v633_v6 = vsel %vm632_vm10, %v631_v40, 0  ;;  %v162_v10 = vadd.s32 %v3132_v34, %v3140_v39  ;;  %v471_v63 = vadd.s32 %v3179_v59, %v3186_v56  ;;  %v491_v4 = vsub.s32 4294967266, %v3241_v46 }
  0xc8   :  { %v268_v12 = vsel %vm266_vm11, %v267_v47, %v3231_v27  ;;  %v3258_v50 = vmul.f32 %v394_v48, %v392_v45  ;;  %v179_v53 = vshll.u32 %v3174_v37, %v3224_v15  ;;  %v635_v43 = vand.u32 31, %v633_v6 }
  0xc9   :  { %v269_v14 = vadd.s32 %v268_v12, %v264_v55  ;;  %v180_v17 = vshrl.u32 %v162_v10, %v178_v58  ;;  %v184_v60 = vshll.u32 %v3245_v1, 23  ;;  %v487_v18 = vsub.s32 32, %v3241_v46 }
  0xca   :  { %v3265_v34 = vmul.f32 %v3037_v25, %v66_v3  ;;  %v636_v59 = vsub.s32 32, %v635_v43  ;;  %v3267_v56 = vshll.u32 %v629_v35, 8  ;;  %v4157_v20 = vand.u32 2147483647, %v3250_v8 }
  0xcb   :  { %v270_v39 = vadd.s32 536870912, %v269_v14  ;;  %v3270_v21 = vadd.s32 127, %v491_v4  ;;  %v634_v22 = vshrl.u32 %v633_v6, 5  ;;  %v638_v37 = vshll.u32 %v4175_v0, %v635_v43 }
  0xcc   :  { %v641_v15 = vshll.u32 %v4173_v2, %v635_v43  ;;  %v639_v27 = vshrl.u32 %v4173_v2, %v636_v59  ;;  %v642_v13 = vshrl.u32 %v4169_v5, %v636_v59  ;;  %v644_v49 = vshll.u32 %v4169_v5, %v635_v43 }
  0xcd   :  { %v3274_v23 = vshrl.u32 %v270_v39, 30  ;;  %v645_v52 = vshrl.u32 %v4171_v7, %v636_v59  ;;  %v647_v31 = vshll.u32 %v4171_v7, %v635_v43  ;;  %v648_v61 = vshrl.u32 %v4166_v9, %v636_v59 }
  0xce   :  { %v650_v36 = vshll.u32 %v4166_v9, %v635_v43  ;;  %v640_v62 = vor.u32 %v639_v27, %v638_v37  ;;  %v643_v45 = vor.u32 %v642_v13, %v641_v15  ;;  %v651_v47 = vshrl.u32 %v4164_v16, %v636_v59 }
  0xcf   :  { %v272_v40 = vshll.u32 %v3274_v23, 30  ;;  %v646_v48 = vor.u32 %v645_v52, %v644_v49  ;;  %v649_v58 = vor.u32 %v648_v61, %v647_v31  ;;  %vm653_vm12 = vcmp.lt.s32.totalorder %v634_v22, 1 }
  0xd0   :  { %v521_v1 = vand.u32 2139095040, %v3250_v8  ;;  %v637_v35 = vshrl.u32 %v4175_v0, %v636_v59  ;;  %v652_v6 = vor.u32 %v651_v47, %v650_v36  ;;  %vm656_vm13 = vcmp.lt.s32.totalorder %v634_v22, 4 }
  0xd1   :  { %v3286_v55 = vsub.s32 %v269_v14, %v272_v40  ;;  %vm655_vm14 = vcmp.lt.s32.totalorder %v634_v22, 3  ;;  %v658_v3 = vsel %vm656_vm13, %v646_v48, 2102212464  ;;  %v661_v10 = vsel %vm653_vm12, %v640_v62, %v643_v45 }
  0xd2   :  { %v662_v4 = vsel %vm656_vm13, %v649_v58, 920167782  ;;  %vm654_vm15 = vcmp.lt.s32.totalorder %v634_v22, 2  ;;  %v665_v39 = vsel %vm653_vm12, %v643_v45, %v646_v48  ;;  %v657_v37 = vsel %vm653_vm12, %v637_v35, %v640_v62 }
  0xd3   :  { %v275_v12 = vsub.s32 0, %v3286_v55  ;;  %v663_v43 = vsel %vm655_vm14, %v646_v48, %v662_v4  ;;  %v659_v15 = vsel %vm655_vm14, %v643_v45, %v658_v3  ;;  %v666_v13 = vsel %vm656_vm13, %v652_v6, 1326507024 }
  0xd4   :  { %v664_v27 = vsel %vm654_vm15, %v661_v10, %v663_v43  ;;  %v667_v49 = vsel %vm655_vm14, %v649_v58, %v666_v13  ;;  %v181_v31 = vor.u32 %v180_v17, %v179_v53  ;;  %v185_v61 = vor.u32 4788187, %v184_v60 }
  0xd5   :  { %v2696_v14 = vmin.u32 %v275_v12, %v3286_v55  ;;  %v3293_v59 = vmul.u32.u64.low %v3267_v56, %v664_v27  ;;  %v3294_v52 = vmul.u32.u64.high %v3267_v56, %v664_v27, %v3293_v59  ;;  %v668_v36 = vsel %vm654_vm15, %v665_v39, %v667_v49  ;;  %v61_v27 = vpop.permute.xlu0 %60 }
  0xd6   :  { %v522_v40 = vshrl.u32 %v521_v1, 23  ;;  %v489_v47 = vshrl.u32 %v471_v63, %v487_v18  ;;  %v3299_v62 = vmul.u32.u64.low %v3267_v56, %v668_v36  ;;  %v3300_v45 = vmul.u32.u64.high %v3267_v56, %v668_v36, %v3299_v62 }
  0xd7   :  { %v277_v48 = vclz %v2696_v14  ;;  %v493_v35 = vshll.u32 %v3270_v21, 23  ;;  %v660_v58 = vsel %vm654_vm15, %v657_v37, %v659_v15  ;;  %v830_v3 = vand.u32 2139095040, %v3265_v34 }
  0xd8   :  { %v2707_v6 = vadd.s32 4294967169, %v522_v40  ;;  %v679_v53 = vadd.s32 1, %v3294_v52  ;;  %v525_v17 = vand.u32 8388607, %v4157_v20  ;;  %v4156_v63 = vand.u32 2147483647, %v3265_v34 }
  0xd9   :  { %v2697_v10 = vadd.s32 4294967294, %v277_v48  ;;  %v188_v60 = vcvt.s32.f32 %v181_v31  ;;  %v488_v18 = vshll.u32 %v3217_v54, %v3241_v46  ;;  %v831_v4 = vshrl.u32 %v830_v3, 23 }
  0xda   :  { %v528_v1 = vadd.s32 1, %v2707_v6  ;;  %v186_v21 = vand.u32 2147483647, %v185_v61  ;;  %v676_v22 = vmul.u32 %v3267_v56, %v660_v58  ;;  %vm678_vm1 = vc.u32 %v3300_v45, %v3293_v59 }
  0xdb   :  { %vm2698_vm0 = vcmp.lt.s32.totalorder %v2697_v10, 0  ;;  %v3314_v12 = vor.u32 %v489_v47, %v488_v18  ;;  %v680_v39 = vsel %vm678_vm1, %v679_v53, %v3294_v52  ;;  %v3319_v37 = vor.u32 4788187, %v493_v35 }
  0xdc   :  { %v3316_v43 = vsel %vm2698_vm0, 0, %v2697_v10  ;;  %vm529_vm2 = vcmp.gt.s32.totalorder %v528_v1, 0  ;;  %v681_v15 = vadd.s32 %v680_v39, %v676_v22  ;;  %v526_v54 = vor.u32 8388608, %v525_v17 }
  0xdd   :  { %v3323_v46 = vand.u32 8388607, %v4156_v63  ;;  %v285_v56 = vsub.s32 4294967266, %v3316_v43  ;;  %v530_v13 = vsel %vm529_vm2, %v528_v1, 0  ;;  %v2719_v14 = vadd.s32 4294967169, %v831_v4 }
  0xde   :  { %v396_v49 = vxor.u32 2147483648, %v3258_v50  ;;  %v3327_v31 = vmul.f32 %v188_v60, %v186_v21  ;;  %v682_v61 = vadd.s32 536870912, %v681_v15  ;;  %v497_v52 = vcvt.s32.f32 %v3314_v12 }
  0xdf   :  { %v265_v36 = vadd.s32 %v3230_v26, %v3236_v33  ;;  %v532_v40 = vand.u32 31, %v530_v13  ;;  %v3333_v47 = vmul.f32 %v3037_v25, %v61_v27  ;;  %v495_v48 = vand.u32 2147483647, %v3319_v37 }
  0xe0   :  { %v3336_v62 = vshrl.u32 %v682_v61, 30  ;;  %v3338_v35 = vshll.u32 %v526_v54, 8  ;;  %v835_v58 = vor.u32 8388608, %v3323_v46  ;;  %v281_v6 = vsub.s32 32, %v3316_v43 }
  0xe1   :  { %v286_v3 = vadd.s32 127, %v285_v56  ;;  %v533_v10 = vsub.s32 32, %v532_v40  ;;  %v837_v53 = vadd.s32 1, %v2719_v14  ;;  %v531_v26 = vshrl.u32 %v530_v13, 5 }
  0xe2   :  { %4194 = vst [vmem:[#allocation6_spill] sm:$0xff] %v3336_v62  ;;  %v684_v17 = vshll.u32 %v3336_v62, 30  ;;  %v535_v33 = vshll.u32 %v4175_v0, %v532_v40  ;;  %v538_v25 = vshll.u32 %v4173_v2, %v532_v40  ;;  %v541_v1 = vshll.u32 %v4169_v5, %v532_v40 }
  0xe3   :  { %v536_v60 = vshrl.u32 %v4173_v2, %v533_v10  ;;  %v539_v18 = vshrl.u32 %v4169_v5, %v533_v10  ;;  %v542_v4 = vshrl.u32 %v4171_v7, %v533_v10  ;;  %v544_v22 = vshll.u32 %v4171_v7, %v532_v40 }
  0xe4   :  { %v3349_v21 = vsub.s32 %v681_v15, %v684_v17  ;;  %v545_v12 = vshrl.u32 %v4166_v9, %v533_v10  ;;  %v547_v39 = vshll.u32 %v4166_v9, %v532_v40  ;;  %vm314_vm3 = vcmp.lt.s32.totalorder %v3040_v28, 0 }
  0xe5   :  { %v537_v37 = vor.u32 %v536_v60, %v535_v33  ;;  %v540_v54 = vor.u32 %v539_v18, %v538_v25  ;;  %v543_v46 = vor.u32 %v542_v4, %v541_v1  ;;  %v548_v27 = vshrl.u32 %v4164_v16, %v533_v10 }
  0xe6   :  { %v687_v56 = vsub.s32 0, %v3349_v21  ;;  %v546_v13 = vor.u32 %v545_v12, %v544_v22  ;;  %vm838_vm4 = vcmp.gt.s32.totalorder %v837_v53, 0  ;;  %v727_v15 = vand.u32 2139095040, %v3333_v47 }
  0xe7   :  { %v287_v14 = vshll.u32 %v286_v3, 23  ;;  %v549_v61 = vor.u32 %v548_v27, %v547_v39  ;;  %vm550_vm5 = vcmp.lt.s32.totalorder %v531_v26, 1  ;;  %vm553_vm6 = vcmp.lt.s32.totalorder %v531_v26, 4 }
  0xe8   :  { %v2712_v17 = vmin.u32 %v687_v56, %v3349_v21  ;;  %v534_v40 = vshrl.u32 %v4175_v0, %v533_v10  ;;  %v555_v63 = vsel %vm553_vm6, %v543_v46, 2102212464  ;;  %v558_v33 = vsel %vm550_vm5, %v537_v37, %v540_v54 }
  0xe9   :  { %vm552_vm7 = vcmp.lt.s32.totalorder %v531_v26, 3  ;;  %v559_v25 = vsel %vm553_vm6, %v546_v13, 920167782  ;;  %v562_v60 = vsel %vm550_vm5, %v540_v54, %v543_v46  ;;  %v563_v18 = vsel %vm553_vm6, %v549_v61, 1326507024 }
  0xea   :  { %v689_v1 = vclz %v2712_v17  ;;  %vm551_vm8 = vcmp.lt.s32.totalorder %v531_v26, 2  ;;  %v554_v4 = vsel %vm550_vm5, %v534_v40, %v537_v37  ;;  %v560_v22 = vsel %vm552_vm7, %v543_v46, %v559_v25 }
  0xeb   :  { %v556_v12 = vsel %vm552_vm7, %v540_v54, %v555_v63  ;;  %v561_v3 = vsel %vm551_vm8, %v558_v33, %v560_v22  ;;  %v564_v39 = vsel %vm552_vm7, %v546_v13, %v563_v18  ;;  %v839_v27 = vsel %vm838_vm4, %v837_v53, 0 }
  0xec   :  { %v2713_v20 = vadd.s32 4294967294, %v689_v1  ;;  %v565_v56 = vsel %vm551_vm8, %v562_v60, %v564_v39  ;;  %v3364_v10 = vmul.u32.u64.low %v3338_v35, %v561_v3  ;;  %v3365_v57 = vmul.u32.u64.high %v3338_v35, %v561_v3, %v3364_v10 }
  0xed   :  { %v283_v41 = vshrl.u32 %v265_v36, %v281_v6  ;;  %v3369_v61 = vmul.u32.u64.low %v3338_v35, %v565_v56  ;;  %v3370_v17 = vmul.u32.u64.high %v3338_v35, %v565_v56, %v3369_v61  ;;  %v841_v37 = vand.u32 31, %v839_v27 }
  0xee   :  { %v3377_v63 = vsel %vm314_vm3, %v396_v49, %v3258_v50  ;;  %v190_v53 = vxor.u32 2147483648, %v3327_v31  ;;  %v3380_v54 = vmul.f32 %v497_v52, %v495_v48  ;;  %v557_v46 = vsel %vm551_vm8, %v554_v4, %v556_v12 }
  0xef   :  { %v282_v36 = vshll.u32 %v3286_v55, %v3316_v43  ;;  %v842_v6 = vsub.s32 32, %v841_v37  ;;  %v3385_v13 = vshll.u32 %v835_v58, 8  ;;  %v4161_v40 = vand.u32 2147483647, %v3333_v47 }
  0xf0   :  { %v288_v33 = vor.u32 4788187, %v287_v14  ;;  %vm2714_vm9 = vcmp.lt.s32.totalorder %v2713_v20, 0  ;;  %v576_v25 = vadd.s32 1, %v3365_v57  ;;  %v728_v50 = vshrl.u32 %v727_v15, 23 }
  0xf1   :  { %v284_v49 = vor.u32 %v283_v41, %v282_v36  ;;  %v573_v60 = vmul.u32 %v3338_v35, %v557_v46  ;;  %vm575_vm10 = vc.u32 %v3370_v17, %v3364_v10  ;;  %v845_v52 = vshrl.u32 %v4173_v2, %v842_v6 }
  0xf2   :  { %v577_v55 = vsel %vm575_vm10, %v576_v25, %v3365_v57  ;;  %v844_v43 = vshll.u32 %v4175_v0, %v841_v37  ;;  %v847_v48 = vshll.u32 %v4173_v2, %v841_v37  ;;  %v848_v58 = vshrl.u32 %v4169_v5, %v842_v6 }
  0xf3   :  { %v3397_v26 = vsel %vm2714_vm9, 0, %v2713_v20  ;;  %v578_v14 = vadd.s32 %v577_v55, %v573_v60  ;;  %v850_v41 = vshll.u32 %v4169_v5, %v841_v37  ;;  %v851_v35 = vshrl.u32 %v4171_v7, %v842_v6 }
  0xf4   :  { %v289_v15 = vand.u32 2147483647, %v288_v33  ;;  %v840_v18 = vshrl.u32 %v839_v27, 5  ;;  %v846_v1 = vor.u32 %v845_v52, %v844_v43  ;;  %v849_v4 = vor.u32 %v848_v58, %v847_v48 }
  0xf5   :  { %v579_v22 = vadd.s32 536870912, %v578_v14  ;;  %v852_v12 = vor.u32 %v851_v35, %v850_v41  ;;  %v853_v57 = vshll.u32 %v4171_v7, %v841_v37  ;;  %v854_v3 = vshrl.u32 %v4166_v9, %v842_v6 }
  0xf6   :  { %v697_v39 = vsub.s32 4294967266, %v3397_v26  ;;  %v856_v20 = vshll.u32 %v4166_v9, %v841_v37  ;;  %v857_v56 = vshrl.u32 %v4164_v16, %v842_v6  ;;  %v2715_v61 = vadd.s32 4294967169, %v728_v50 }
  0xf7   :  { %v693_v46 = vsub.s32 32, %v3397_v26  ;;  %v3407_v36 = vshrl.u32 %v579_v22, 30  ;;  %v843_v27 = vshrl.u32 %v4175_v0, %v842_v6  ;;  %v855_v33 = vor.u32 %v854_v3, %v853_v57 }
  0xf8   :  { %vm108_vm11 = vcmp.lt.s32.totalorder %v3043_v29, 0  ;;  %v858_v25 = vor.u32 %v857_v56, %v856_v20  ;;  %vm859_vm12 = vcmp.lt.s32.totalorder %v840_v18, 1  ;;  %vm861_vm13 = vcmp.lt.s32.totalorder %v840_v18, 3 }
  0xf9   :  { %4195 = vst [vmem:[#allocation7_spill] sm:$0xff] %v3407_v36  ;;  %vm862_vm14 = vcmp.lt.s32.totalorder %v840_v18, 4  ;;  %v581_v60 = vshll.u32 %v3407_v36, 30  ;;  %v867_v37 = vsel %vm859_vm12, %v846_v1, %v849_v4  ;;  %v698_v43 = vadd.s32 127, %v697_v39 }
  0xfa   :  { %v864_v52 = vsel %vm862_vm14, %v852_v12, 2102212464  ;;  %v868_v55 = vsel %vm862_vm14, %v855_v33, 920167782  ;;  %vm860_vm15 = vcmp.lt.s32.totalorder %v840_v18, 2  ;;  %v871_v48 = vsel %vm859_vm12, %v849_v4, %v852_v12 }
  0xfb   :  { %v869_v50 = vsel %vm861_vm13, %v852_v12, %v868_v55  ;;  %v3412_v58 = vsub.s32 %v578_v14, %v581_v60  ;;  %v863_v41 = vsel %vm859_vm12, %v843_v27, %v846_v1  ;;  %v872_v35 = vsel %vm862_vm14, %v858_v25, 1326507024  ;;  %v76_v27 = vpop.permute.xlu1 %75 }
  0xfc   :  { %v870_v6 = vsel %vm860_vm15, %v867_v37, %v869_v50  ;;  %v865_v22 = vsel %vm861_vm13, %v849_v4, %v864_v52  ;;  %v873_v57 = vsel %vm861_vm13, %v855_v33, %v872_v35  ;;  %v291_v56 = vcvt.s32.f32 %v284_v49 }
  0xfd   :  { %v3416_v3 = vmul.u32.u64.low %v3385_v13, %v870_v6  ;;  %v3417_v20 = vmul.u32.u64.high %v3385_v13, %v870_v6, %v3416_v3  ;;  %v584_v30 = vsub.s32 0, %v3412_v58  ;;  %v874_v39 = vsel %vm860_vm15, %v871_v48, %v873_v57 }
  0xfe   :  { %v734_v55 = vadd.s32 1, %v2715_v61  ;;  %v677_v14 = vadd.s32 %v3293_v59, %v3300_v45  ;;  %v3425_v1 = vmul.u32.u64.low %v3385_v13, %v874_v39  ;;  %v3426_v12 = vmul.u32.u64.high %v3385_v13, %v874_v39, %v3425_v1 }
  0xff   :  { %v731_v4 = vand.u32 8388607, %v4161_v40  ;;  %v3430_v33 = vmul.f32 %v291_v56, %v289_v15  ;;  %v2708_v49 = vmin.u32 %v584_v30, %v3412_v58  ;;  %v866_v25 = vsel %vm860_vm15, %v863_v41, %v865_v22  ;;  %v3445_v30 = vld [vmem:[%s4153_s1] ss:$0 sm:$0xff] }
 0x100   :  { %vm735_vm0 = vcmp.gt.s32.totalorder %v734_v55, 0  ;;  %v695_v60 = vshrl.u32 %v677_v14, %v693_v46  ;;  %v699_v61 = vshll.u32 %v698_v43, 23  ;;  %v885_v52 = vadd.s32 1, %v3417_v20 }
 0x101   :  { %v736_v59 = vsel %vm735_vm0, %v734_v55, 0  ;;  %v3440_v45 = vsel %vm108_vm11, %v190_v53, %v3327_v31  ;;  %v586_v37 = vclz %v2708_v49  ;;  %v3448_v18 = vmul.f32 %v3445_v30, %v76_v27 }
 0x102   :  { %v738_v15 = vand.u32 31, %v736_v59  ;;  %v499_v46 = vxor.u32 2147483648, %v3380_v54  ;;  %v694_v43 = vshll.u32 %v3349_v21, %v3397_v26  ;;  %v882_v50 = vmul.u32 %v3385_v13, %v866_v25 }
 0x103   :  { %vm884_vm1 = vc.u32 %v3426_v12, %v3416_v3  ;;  %v293_v31 = vxor.u32 2147483648, %v3430_v33  ;;  %v2709_v53 = vadd.s32 4294967294, %v586_v37  ;;  %v700_v35 = vor.u32 4788187, %v699_v61 }
 0x104   :  { %v886_v48 = vsel %vm884_vm1, %v885_v52, %v3417_v20  ;;  %v739_v41 = vsub.s32 32, %v738_v15  ;;  %v3458_v6 = vor.u32 %v695_v60, %v694_v43  ;;  %v732_v57 = vor.u32 8388608, %v731_v4 }
 0x105   :  { %v887_v22 = vadd.s32 %v886_v48, %v882_v50  ;;  %v741_v56 = vshll.u32 %v4175_v0, %v738_v15  ;;  %v744_v13 = vshll.u32 %v4173_v2, %v738_v15  ;;  %v747_v55 = vshll.u32 %v4169_v5, %v738_v15 }
 0x106   :  { %v742_v21 = vshrl.u32 %v4173_v2, %v739_v41  ;;  %v745_v26 = vshrl.u32 %v4169_v5, %v739_v41  ;;  %v748_v14 = vshrl.u32 %v4171_v7, %v739_v41  ;;  %v751_v20 = vshrl.u32 %v4166_v9, %v739_v41 }
 0x107   :  { %v888_v39 = vadd.s32 536870912, %v887_v22  ;;  %vm2710_vm2 = vcmp.lt.s32.totalorder %v2709_v53, 0  ;;  %v737_v1 = vshrl.u32 %v736_v59, 5  ;;  %v750_v27 = vshll.u32 %v4171_v7, %v738_v15 }
 0x108   :  { %v1036_v4 = vand.u32 2139095040, %v3448_v18  ;;  %v743_v25 = vor.u32 %v742_v21, %v741_v56  ;;  %v746_v60 = vor.u32 %v745_v26, %v744_v13  ;;  %v749_v61 = vor.u32 %v748_v14, %v747_v55 }
 0x109   :  { %v3469_v49 = vshrl.u32 %v888_v39, 30  ;;  %vm417_vm4 = vcmp.lt.s32.totalorder %v3054_v38, 0  ;;  %v752_v52 = vor.u32 %v751_v20, %v750_v27  ;;  %v753_v37 = vshll.u32 %v4166_v9, %v738_v15 }
 0x10a   :  { %v754_v43 = vshrl.u32 %v4164_v16, %v739_v41  ;;  %v4168_v50 = vand.u32 2147483647, %v3448_v18  ;;  %v701_v48 = vand.u32 2147483647, %v700_v35  ;;  %v703_v59 = vcvt.s32.f32 %v3458_v6 }
 0x10b   :  { %4196 = vst [vmem:[#allocation8_spill] sm:$0xff] %v3469_v49  ;;  %v589_v40 = vsel %vm2710_vm2, 0, %v2709_v53  ;;  %v890_v44 = vshll.u32 %v3469_v49, 30  ;;  %vm756_vm5 = vcmp.lt.s32.totalorder %v737_v1, 1  ;;  %vm759_vm6 = vcmp.lt.s32.totalorder %v737_v1, 4 }
 0x10c   :  { %v755_v39 = vor.u32 %v754_v43, %v753_v37  ;;  %v772_v56 = vshll.u32 %v732_v57, 8  ;;  %vm211_vm7 = vcmp.lt.s32.totalorder %v3063_v51, 0  ;;  %v761_v15 = vsel %vm759_vm6, %v749_v61, 2102212464 }
 0x10d   :  { %v3478_v21 = vsub.s32 %v887_v22, %v890_v44  ;;  %v764_v13 = vsel %vm756_vm5, %v743_v25, %v746_v60  ;;  %v1037_v26 = vshrl.u32 %v1036_v4, 23  ;;  %v594_v55 = vsub.s32 4294967266, %v589_v40 }
 0x10e   :  { %v740_v35 = vshrl.u32 %v4175_v0, %v739_v41  ;;  %vm758_vm8 = vcmp.lt.s32.totalorder %v737_v1, 3  ;;  %v765_v53 = vsel %vm759_vm6, %v752_v52, 920167782  ;;  %vm757_vm9 = vcmp.lt.s32.totalorder %v737_v1, 2 }
 0x10f   :  { %v893_v6 = vsub.s32 0, %v3478_v21  ;;  %v766_v14 = vsel %vm758_vm8, %v749_v61, %v765_v53  ;;  %v768_v57 = vsel %vm756_vm5, %v746_v60, %v749_v61  ;;  %v762_v22 = vsel %vm758_vm8, %v746_v60, %v761_v15  ;;  %v71_v61 = vpop.permute.xlu0 %70 }
 0x110   :  { %v760_v44 = vsel %vm756_vm5, %v740_v35, %v743_v25  ;;  %v767_v20 = vsel %vm757_vm9, %v764_v13, %v766_v14  ;;  %v769_v27 = vsel %vm759_vm6, %v755_v39, 1326507024  ;;  %v590_v32 = vsub.s32 32, %v589_v40 }
 0x111   :  { %v2720_v4 = vmin.u32 %v893_v6, %v3478_v21  ;;  %v770_v37 = vsel %vm758_vm8, %v752_v52, %v769_v27  ;;  %v3490_v41 = vmul.u32.u64.low %v772_v56, %v767_v20  ;;  %v3491_v43 = vmul.u32.u64.high %v772_v56, %v767_v20, %v3490_v41 }
 0x112   :  { %v595_v16 = vadd.s32 127, %v594_v55  ;;  %v771_v53 = vsel %vm757_vm9, %v768_v57, %v770_v37  ;;  %v2727_v9 = vadd.s32 4294967169, %v1037_v26  ;;  %v3500_v25 = vsel %vm417_vm4, %v499_v46, %v3380_v54 }
 0x113   :  { %v895_v60 = vclz %v2720_v4  ;;  %v3502_v39 = vmul.u32.u64.low %v772_v56, %v771_v53  ;;  %v3503_v52 = vmul.u32.u64.high %v772_v56, %v771_v53, %v3502_v39  ;;  %v3505_v15 = vmul.f32 %v703_v59, %v701_v48 }
 0x114   :  { %v574_v13 = vadd.s32 %v3364_v10, %v3370_v17  ;;  %v763_v55 = vsel %vm757_vm9, %v760_v44, %v762_v22  ;;  %v1043_v26 = vadd.s32 1, %v2727_v9  ;;  %v782_v6 = vadd.s32 1, %v3491_v43 }
 0x115   :  { %v2721_v35 = vadd.s32 4294967294, %v895_v60  ;;  %v1040_v14 = vand.u32 8388607, %v4168_v50  ;;  %v3514_v54 = vmul.f32 %v3445_v30, %v71_v61  ;;  %v3521_v46 = vsel %vm211_vm7, %v293_v31, %v3430_v33 }
 0x116   :  { %v592_v10 = vshrl.u32 %v574_v13, %v590_v32  ;;  %v596_v17 = vshll.u32 %v595_v16, 23  ;;  %vm1044_vm10 = vcmp.gt.s32.totalorder %v1043_v26, 0  ;;  %v779_v9 = vmul.u32 %v772_v56, %v763_v55 }
 0x117   :  { %vm2722_vm12 = vcmp.lt.s32.totalorder %v2721_v35, 0  ;;  %vm781_vm13 = vc.u32 %v3503_v52, %v3490_v41  ;;  %v1045_v1 = vsel %vm1044_vm10, %v1043_v26, 0  ;;  %v591_v48 = vshll.u32 %v3412_v58, %v589_v40 }
 0x118   :  { %v3526_v59 = vsel %vm2722_vm12, 0, %v2721_v35  ;;  %v783_v57 = vsel %vm781_vm13, %v782_v6, %v3491_v43  ;;  %v1047_v44 = vand.u32 31, %v1045_v1  ;;  %v705_v22 = vxor.u32 2147483648, %v3505_v15 }
 0x119   :  { %v784_v33 = vadd.s32 %v783_v57, %v779_v9  ;;  %v1041_v31 = vor.u32 8388608, %v1040_v14  ;;  %v4177_v32 = vand.u32 2147483647, %v3514_v54  ;;  %v593_v16 = vor.u32 %v592_v10, %v591_v48 }
 0x11a   :  { %v597_v20 = vor.u32 4788187, %v596_v17  ;;  %v1048_v56 = vsub.s32 32, %v1047_v44  ;;  %v933_v27 = vand.u32 2139095040, %v3514_v54  ;;  %v903_v4 = vsub.s32 4294967266, %v3526_v59 }
 0x11b   :  { %v785_v37 = vadd.s32 536870912, %v784_v33  ;;  %v1050_v40 = vshll.u32 %v4175_v0, %v1047_v44  ;;  %v1053_v58 = vshll.u32 %v4173_v2, %v1047_v44  ;;  %v1056_v61 = vshll.u32 %v4169_v5, %v1047_v44 }
 0x11c   :  { %v1051_v43 = vshrl.u32 %v4173_v2, %v1048_v56  ;;  %v1054_v53 = vshrl.u32 %v4169_v5, %v1048_v56  ;;  %v1057_v60 = vshrl.u32 %v4171_v7, %v1048_v56  ;;  %v1046_v13 = vshrl.u32 %v1045_v1, 5 }
 0x11d   :  { %v3539_v39 = vshrl.u32 %v785_v37, 30  ;;  %v1059_v55 = vshll.u32 %v4171_v7, %v1047_v44  ;;  %v4198_v26 = vmov 920167782   ;;  %v598_v6 = vand.u32 2147483647, %v597_v20 }
 0x11e   :  { %v1060_v35 = vshrl.u32 %v4198_v26, %v1048_v56  ;;  %v1052_v14 = vor.u32 %v1051_v43, %v1050_v40  ;;  %v1055_v10 = vor.u32 %v1054_v53, %v1053_v58  ;;  %v1058_v17 = vor.u32 %v1057_v60, %v1056_v61 }
 0x11f   :  { %4197 = vst [vmem:[#allocation9_spill] sm:$0xff] %v3539_v39  ;;  %vm623_vm14 = vcmp.lt.s32.totalorder %v3198_v11, 0  ;;  %v787_v9 = vshll.u32 %v3539_v39, 30  ;;  %v1081_v57 = vshll.u32 %v1041_v31, 8  ;;  %v937_v50 = vand.u32 8388607, %v4177_v32 }
 0x120   :  { %v1061_v48 = vor.u32 %v1060_v35, %v1059_v55  ;;  %v904_v37 = vadd.s32 127, %v903_v4  ;;  %v1062_v1 = vshll.u32 %v4198_v26, %v1047_v44  ;;  %v4199_v5 = vmov 1326507024  }
 0x121   :  { %v1063_v7 = vshrl.u32 %v4199_v5, %v1048_v56  ;;  %v934_v2 = vshrl.u32 %v933_v27, 23  ;;  %v3549_v0 = vsub.s32 %v784_v33, %v787_v9  ;;  %vm1065_vm15 = vcmp.lt.s32.totalorder %v1046_v13, 1 }
 0x122   :  { %vm1067_vm0 = vcmp.lt.s32.totalorder %v1046_v13, 3  ;;  %vm1068_vm1 = vcmp.lt.s32.totalorder %v1046_v13, 4  ;;  %v1073_v58 = vsel %vm1065_vm15, %v1052_v14, %v1055_v10  ;;  %v4200_v53 = vmov 683565275  }
 0x123   :  { %v1064_v20 = vor.u32 %v1063_v7, %v1062_v1  ;;  %v1070_v40 = vsel %vm1068_vm1, %v1058_v17, 2102212464  ;;  %v1074_v43 = vsel %vm1068_vm1, %v1061_v48, 920167782  ;;  %v790_v31 = vsub.s32 0, %v3549_v0 }
 0x124   :  { %v1049_v61 = vshrl.u32 %v4200_v53, %v1048_v56  ;;  %vm1066_vm2 = vcmp.lt.s32.totalorder %v1046_v13, 2  ;;  %v1075_v44 = vsel %vm1067_vm0, %v1058_v17, %v1074_v43  ;;  %v905_v4 = vshll.u32 %v904_v37, 23  ;;  %v86_v43 = vpop.permute.xlu1 %85 }
 0x125   :  { %v1076_v27 = vsel %vm1066_vm2, %v1073_v58, %v1075_v44  ;;  %v1077_v33 = vsel %vm1065_vm15, %v1055_v10, %v1058_v17  ;;  %v1078_v60 = vsel %vm1068_vm1, %v1064_v20, 1326507024  ;;  %v2716_v55 = vmin.u32 %v790_v31, %v3549_v0 }
 0x126   :  { %v1069_v7 = vsel %vm1065_vm15, %v1049_v61, %v1052_v14  ;;  %v1071_v35 = vsel %vm1067_vm0, %v1055_v10, %v1070_v40  ;;  %v1079_v9 = vsel %vm1067_vm0, %v1061_v48, %v1078_v60  ;;  %v2723_v37 = vadd.s32 4294967169, %v934_v2 }
 0x127   :  { %v1080_v1 = vsel %vm1066_vm2, %v1077_v33, %v1079_v9  ;;  %v3562_v56 = vmul.u32.u64.low %v1081_v57, %v1076_v27  ;;  %v3563_v32 = vmul.u32.u64.high %v1081_v57, %v1076_v27, %v3562_v56  ;;  %v600_v58 = vcvt.s32.f32 %v593_v16  ;;  %v81_v27 = vpop.permute.xlu0 %80 }
 0x128   :  { %v792_v44 = vclz %v2716_v55  ;;  %v3566_v17 = vmul.u32.u64.low %v1081_v57, %v1080_v1  ;;  %v3567_v20 = vmul.u32.u64.high %v1081_v57, %v1080_v1, %v3566_v17  ;;  %v3572_v14 = vsel %vm623_vm14, %v705_v22, %v3505_v15 }
 0x129   :  { %4201 = vst [vmem:[#allocation10_spill] sm:$0xff] %v3572_v14  ;;  %v883_v10 = vadd.s32 %v3416_v3, %v3426_v12  ;;  %v1072_v48 = vsel %vm1066_vm2, %v1069_v7, %v1071_v35  ;;  %v940_v40 = vadd.s32 1, %v2723_v37  ;;  %v3577_v31 = vmul.f32 %v600_v58, %v598_v6 }
 0x12a   :  { %v899_v2 = vsub.s32 32, %v3526_v59  ;;  %v2717_v16 = vadd.s32 4294967294, %v792_v44  ;;  %v3581_v61 = vmul.f32 %v3445_v30, %v86_v43  ;;  %v3583_v33 = vor.u32 4788187, %v905_v4 }
 0x12b   :  { %v1091_v15 = vadd.s32 1, %v3563_v32  ;;  %v938_v22 = vor.u32 8388608, %v937_v50  ;;  %vm941_vm5 = vcmp.gt.s32.totalorder %v940_v40, 0  ;;  %v1088_v3 = vmul.u32 %v1081_v57, %v1072_v48 }
 0x12c   :  { %vm2718_vm6 = vcmp.lt.s32.totalorder %v2717_v16, 0  ;;  %vm1090_vm8 = vc.u32 %v3567_v20, %v3562_v56  ;;  %v942_v12 = vsel %vm941_vm5, %v940_v40, 0  ;;  %v3592_v55 = vmul.f32 %v3445_v30, %v81_v27 }
 0x12d   :  { %v3588_v13 = vsel %vm2718_vm6, 0, %v2717_v16  ;;  %v1092_v6 = vsel %vm1090_vm8, %v1091_v15, %v3563_v32  ;;  %v944_v60 = vand.u32 31, %v942_v12  ;;  %v901_v7 = vshrl.u32 %v883_v10, %v899_v2 }
 0x12e   :  { %v780_v50 = vadd.s32 %v3490_v41, %v3503_v52  ;;  %v1093_v57 = vadd.s32 %v1092_v6, %v1088_v3  ;;  %v3599_v1 = vshll.u32 %v938_v22, 8  ;;  %v800_v32 = vsub.s32 4294967266, %v3588_v13 }
 0x12f   :  { %v945_v9 = vsub.s32 32, %v944_v60  ;;  %v947_v30 = vshll.u32 %v4200_v53, %v944_v60  ;;  %v4202_v58 = vmov 2475754826   ;;  %v4203_v10 = vmov 2131351028  }
 0x130   :  { %v1094_v43 = vadd.s32 536870912, %v1093_v57  ;;  %v950_v44 = vshll.u32 %v4202_v58, %v944_v60  ;;  %v953_v41 = vshll.u32 %v4203_v10, %v944_v60  ;;  %v4204_v52 = vmov 2102212464  }
 0x131   :  { %v948_v17 = vshrl.u32 %v4202_v58, %v945_v9  ;;  %v951_v48 = vshrl.u32 %v4203_v10, %v945_v9  ;;  %v954_v40 = vshrl.u32 %v4204_v52, %v945_v9  ;;  %v943_v16 = vshrl.u32 %v942_v12, 5 }
 0x132   :  { %v3609_v2 = vshrl.u32 %v1094_v43, 30  ;;  %v956_v27 = vshll.u32 %v4204_v52, %v944_v60  ;;  %v957_v15 = vshrl.u32 %v4198_v26, %v945_v9  ;;  %v1242_v35 = vand.u32 2139095040, %v3581_v61 }
 0x133   :  { %v949_v22 = vor.u32 %v948_v17, %v947_v30  ;;  %v952_v3 = vor.u32 %v951_v48, %v950_v44  ;;  %v955_v6 = vor.u32 %v954_v40, %v953_v41  ;;  %v801_v37 = vadd.s32 127, %v800_v32 }
 0x134   :  { %4205 = vst [vmem:[#allocation11_spill] sm:$0xff] %v3609_v2  ;;  %v1096_v4 = vshll.u32 %v3609_v2, 30  ;;  %v958_v39 = vor.u32 %v957_v15, %v956_v27  ;;  %v1139_v49 = vand.u32 2139095040, %v3592_v55  ;;  %v796_v36 = vsub.s32 32, %v3588_v13 }
 0x135   :  { %v946_v43 = vshrl.u32 %v4200_v53, %v945_v9  ;;  %v959_v12 = vshll.u32 %v4198_v26, %v944_v60  ;;  %v960_v14 = vshrl.u32 %v4199_v5, %v945_v9  ;;  %vm962_vm9 = vcmp.lt.s32.totalorder %v943_v16, 1 }
 0x136   :  { %v3620_v11 = vsub.s32 %v1093_v57, %v1096_v4  ;;  %vm964_vm10 = vcmp.lt.s32.totalorder %v943_v16, 3  ;;  %vm965_vm12 = vcmp.lt.s32.totalorder %v943_v16, 4  ;;  %v970_v44 = vsel %vm962_vm9, %v949_v22, %v952_v3 }
 0x137   :  { %v961_v30 = vor.u32 %v960_v14, %v959_v12  ;;  %v967_v32 = vsel %vm965_vm12, %v955_v6, 2102212464  ;;  %v971_v17 = vsel %vm965_vm12, %v958_v39, 920167782  ;;  %v802_v48 = vshll.u32 %v801_v37, 23 }
 0x138   :  { %v1099_v41 = vsub.s32 0, %v3620_v11  ;;  %vm963_vm13 = vcmp.lt.s32.totalorder %v943_v16, 2  ;;  %v972_v40 = vsel %vm964_vm10, %v955_v6, %v971_v17  ;;  %v798_v27 = vshrl.u32 %v780_v50, %v796_v36 }
 0x139   :  { %v973_v60 = vsel %vm963_vm13, %v970_v44, %v972_v40  ;;  %v974_v4 = vsel %vm962_vm9, %v952_v3, %v955_v6  ;;  %v975_v57 = vsel %vm965_vm12, %v961_v30, 1326507024  ;;  %v966_v14 = vsel %vm962_vm9, %v946_v43, %v949_v22 }
 0x13a   :  { %v2728_v9 = vmin.u32 %v1099_v41, %v3620_v11  ;;  %v968_v15 = vsel %vm964_vm10, %v952_v3, %v967_v32  ;;  %v976_v12 = vsel %vm964_vm10, %v958_v39, %v975_v57  ;;  %v1243_v36 = vshrl.u32 %v1242_v35, 23 }
 0x13b   :  { %v977_v37 = vsel %vm963_vm13, %v974_v4, %v976_v12  ;;  %v3633_v2 = vmul.u32.u64.low %v3599_v1, %v973_v60  ;;  %v3634_v62 = vmul.u32.u64.high %v3599_v1, %v973_v60, %v3633_v2  ;;  %v803_v50 = vor.u32 4788187, %v802_v48 }
 0x13c   :  { %v1101_v44 = vclz %v2728_v9  ;;  %v3638_v6 = vmul.u32.u64.low %v3599_v1, %v977_v37  ;;  %v3639_v30 = vmul.u32.u64.high %v3599_v1, %v977_v37, %v3638_v6  ;;  %v797_v22 = vshll.u32 %v3549_v0, %v3588_v13 }
 0x13d   :  { %v969_v3 = vsel %vm963_vm13, %v966_v14, %v968_v15  ;;  %v2735_v39 = vadd.s32 4294967169, %v1243_v36  ;;  %v1140_v43 = vshrl.u32 %v1139_v49, 23  ;;  %v4206_v32 = vshll.u32 %v3478_v21, %v3526_v59 }
 0x13e   :  { %v2729_v41 = vadd.s32 4294967294, %v1101_v44  ;;  %v4207_v35 = vand.u32 2147483647, %v3581_v61  ;;  %v4190_v40 = vand.u32 2147483647, %v3592_v55  ;;  %v799_v60 = vor.u32 %v798_v27, %v797_v22 }
 0x13f   :  { %v902_v17 = vor.u32 %v901_v7, %v4206_v32  ;;  %v988_v4 = vadd.s32 1, %v3634_v62  ;;  %v1249_v57 = vadd.s32 1, %v2735_v39  ;;  %v2731_v9 = vadd.s32 4294967169, %v1140_v43 }
 0x140   :  { %v1246_v48 = vand.u32 8388607, %v4207_v35  ;;  %v804_v0 = vand.u32 2147483647, %v803_v50  ;;  %vm2730_vm15 = vcmp.lt.s32.totalorder %v2729_v41, 0  ;;  %v985_v13 = vmul.u32 %v3599_v1, %v969_v3 }
 0x141   :  { %vm987_vm0 = vc.u32 %v3639_v30, %v3633_v2  ;;  %v1104_v49 = vsel %vm2730_vm15, 0, %v2729_v41  ;;  %vm1250_vm1 = vcmp.gt.s32.totalorder %v1249_v57, 0  ;;  %v1146_v59 = vadd.s32 1, %v2731_v9 }
 0x142   :  { %v989_v21 = vsel %vm987_vm0, %v988_v4, %v3634_v62  ;;  %v909_v7 = vcvt.s32.f32 %v902_v17  ;;  %v1247_v14 = vor.u32 8388608, %v1246_v48  ;;  %v3657_v27 = vand.u32 8388607, %v4190_v40 }
 0x143   :  { %v990_v16 = vadd.s32 %v989_v21, %v985_v13  ;;  %v806_v15 = vcvt.s32.f32 %v799_v60  ;;  %v1105_v12 = vsub.s32 32, %v1104_v49  ;;  %v1109_v37 = vsub.s32 4294967266, %v1104_v49 }
 0x144   :  { %v1251_v36 = vsel %vm1250_vm1, %v1249_v57, 0  ;;  %v602_v1 = vxor.u32 2147483648, %v3577_v31  ;;  %v4208_v50 = vand.u32 2147483647, %v3583_v33  ;;  %v1089_v62 = vadd.s32 %v3562_v56, %v3567_v20 }
 0x145   :  { %v991_v6 = vadd.s32 536870912, %v990_v16  ;;  %v3666_v22 = vmul.f32 %v806_v15, %v804_v0  ;;  %v1253_v3 = vand.u32 31, %v1251_v36  ;;  %vm1147_vm2 = vcmp.gt.s32.totalorder %v1146_v59, 0 }
 0x146   :  { %v3662_v44 = vmul.f32 %v909_v7, %v4208_v50  ;;  %v192_v39 = vsub.s32 4, %v3171_v19  ;;  %v1106_v43 = vshll.u32 %v3620_v11, %v1104_v49  ;;  %v3672_v17 = vshll.u32 %v1247_v14, 8 }
 0x147   :  { %v3670_v32 = vshrl.u32 %v991_v6, 30  ;;  %v1144_v33 = vor.u32 8388608, %v3657_v27  ;;  %v1107_v41 = vshrl.u32 %v1089_v62, %v1105_v12  ;;  %v1110_v35 = vadd.s32 127, %v1109_v37 }
 0x148   :  { %v1252_v48 = vshrl.u32 %v1251_v36, 5  ;;  %v1254_v60 = vsub.s32 32, %v1253_v3  ;;  %v1256_v20 = vshll.u32 %v4200_v53, %v1253_v3  ;;  %v1259_v4 = vshll.u32 %v4202_v58, %v1253_v3 }
 0x149   :  { %v993_v56 = vshll.u32 %v3670_v32, 30  ;;  %v1148_v57 = vsel %vm1147_vm2, %v1146_v59, 0  ;;  %v1262_v0 = vshll.u32 %v4203_v10, %v1253_v3  ;;  %v1265_v21 = vshll.u32 %v4204_v52, %v1253_v3 }
 0x14a   :  { %v1257_v9 = vshrl.u32 %v4202_v58, %v1254_v60  ;;  %v1260_v11 = vshrl.u32 %v4203_v10, %v1254_v60  ;;  %v1263_v13 = vshrl.u32 %v4204_v52, %v1254_v60  ;;  %v1266_v7 = vshrl.u32 %v4198_v26, %v1254_v60 }
 0x14b   :  { %v3682_v49 = vsub.s32 %v990_v16, %v993_v56  ;;  %v1268_v14 = vshll.u32 %v4198_v26, %v1253_v3  ;;  %v1269_v59 = vshrl.u32 %v4199_v5, %v1254_v60  ;;  %v1111_v37 = vshll.u32 %v1110_v35, 23 }
 0x14c   :  { %v1258_v27 = vor.u32 %v1257_v9, %v1256_v20  ;;  %v1261_v15 = vor.u32 %v1260_v11, %v1259_v4  ;;  %v1264_v12 = vor.u32 %v1263_v13, %v1262_v0  ;;  %v1255_v50 = vshrl.u32 %v4200_v53, %v1254_v60 }
 0x14d   :  { %v996_v36 = vsub.s32 0, %v3682_v49  ;;  %v1267_v62 = vor.u32 %v1266_v7, %v1265_v21  ;;  %v4209_v16 = vand.u32 2147483647, %v3043_v29  ;;  %v1270_v56 = vor.u32 %v1269_v59, %v1268_v14 }
 0x14e   :  { %vm1271_vm6 = vcmp.lt.s32.totalorder %v1252_v48, 1  ;;  %vm1273_vm8 = vcmp.lt.s32.totalorder %v1252_v48, 3  ;;  %vm1274_vm9 = vcmp.lt.s32.totalorder %v1252_v48, 4  ;;  %v3698_v13 = vor.u32 %v1107_v41, %v1106_v43 }
 0x14f   :  { %vm3692_vm5 = vcmp.le.f32.partialorder %v4209_v16, 0.7853982  ;;  %v2724_v3 = vmin.u32 %v996_v36, %v3682_v49  ;;  %v1275_v20 = vsel %vm1271_vm6, %v1255_v50, %v1258_v27  ;;  %v1276_v4 = vsel %vm1274_vm9, %v1264_v12, 2102212464 }
 0x150   :  { %v1279_v35 = vsel %vm1271_vm6, %v1258_v27, %v1261_v15  ;;  %v1277_v9 = vsel %vm1273_vm8, %v1261_v15, %v1276_v4  ;;  %v1280_v11 = vsel %vm1274_vm9, %v1267_v62, 920167782  ;;  %v1283_v60 = vsel %vm1271_vm6, %v1261_v15, %v1264_v12 }
 0x151   :  { %v1284_v0 = vsel %vm1274_vm9, %v1270_v56, 1326507024  ;;  %v998_v21 = vclz %v2724_v3  ;;  %vm1272_vm10 = vcmp.lt.s32.totalorder %v1252_v48, 2  ;;  %v1281_v7 = vsel %vm1273_vm8, %v1264_v12, %v1280_v11 }
 0x152   :  { %v3701_v14 = vor.u32 4788187, %v1111_v37  ;;  %v1278_v59 = vsel %vm1272_vm10, %v1275_v20, %v1277_v9  ;;  %v1282_v16 = vsel %vm1272_vm10, %v1279_v35, %v1281_v7  ;;  %v1285_v36 = vsel %vm1273_vm8, %v1267_v62, %v1284_v0 }
 0x153   :  { %v2725_v50 = vadd.s32 4294967294, %v998_v21  ;;  %v1286_v40 = vsel %vm1272_vm10, %v1283_v60, %v1285_v36  ;;  %v3705_v27 = vmul.u32.u64.low %v3672_v17, %v1282_v16  ;;  %v3706_v4 = vmul.u32.u64.high %v3672_v17, %v1282_v16, %v3705_v27 }
 0x154   :  { %v3710_v43 = vmul.u32.u64.low %v3672_v17, %v1286_v40  ;;  %v3711_v41 = vmul.u32.u64.high %v3672_v17, %v1286_v40, %v3710_v43  ;;  %v3713_v15 = vshrl.u32 %v1148_v57, 5  ;;  %v1150_v12 = vand.u32 31, %v1148_v57 }
 0x155   :  { %v986_v37 = vadd.s32 %v3633_v2, %v3639_v30  ;;  %vm2726_vm12 = vcmp.lt.s32.totalorder %v2725_v50, 0  ;;  %v3717_v48 = vshll.u32 %v1144_v33, 8  ;;  %v3722_v62 = vsel %vm108_vm11, %v192_v39, %v3171_v19 }
 0x156   :  { %v1115_v56 = vcvt.s32.f32 %v3698_v13  ;;  %v1001_v3 = vsel %vm2726_vm12, 0, %v2725_v50  ;;  %v1151_v20 = vsub.s32 32, %v1150_v12  ;;  %v194_v40 = vsel %vm3692_vm5, %v3043_v29, %v3440_v45 }
 0x157   :  { %v1113_v57 = vand.u32 2147483647, %v3701_v14  ;;  %v1006_v2 = vsub.s32 4294967266, %v1001_v3  ;;  %v1294_v30 = vmul.u32 %v3672_v17, %v1278_v59  ;;  %v1297_v33 = vadd.s32 1, %v3706_v4 }
 0x158   :  { %vm1296_vm11 = vc.u32 %v3711_v41, %v3705_v27  ;;  %v1153_v19 = vshll.u32 %v4200_v53, %v1150_v12  ;;  %v1154_v39 = vshrl.u32 %v4202_v58, %v1151_v20  ;;  %vm1168_vm13 = vcmp.lt.s32.totalorder %v3713_v15, 1 }
 0x159   :  { %v1007_v35 = vadd.s32 127, %v1006_v2  ;;  %v1298_v9 = vsel %vm1296_vm11, %v1297_v33, %v3706_v4  ;;  %v1156_v45 = vshll.u32 %v4202_v58, %v1150_v12  ;;  %v1157_v11 = vshrl.u32 %v4203_v10, %v1151_v20 }
 0x15a   :  { %vm1169_vm15 = vcmp.lt.s32.totalorder %v3713_v15, 2  ;;  %v1299_v17 = vadd.s32 %v1298_v9, %v1294_v30  ;;  %v1159_v60 = vshll.u32 %v4203_v10, %v1150_v12  ;;  %v1160_v0 = vshrl.u32 %v4204_v52, %v1151_v20 }
 0x15b   :  { %vm1170_vm0 = vcmp.lt.s32.totalorder %v3713_v15, 3  ;;  %v1002_v13 = vsub.s32 32, %v1001_v3  ;;  %v1008_v21 = vshll.u32 %v1007_v35, 23  ;;  %v1155_v7 = vor.u32 %v1154_v39, %v1153_v19 }
 0x15c   :  { %v1158_v14 = vor.u32 %v1157_v11, %v1156_v45  ;;  %vm520_vm1 = vcmp.lt.s32.totalorder %v3250_v8, 0  ;;  %v1300_v59 = vadd.s32 536870912, %v1299_v17  ;;  %v1161_v16 = vor.u32 %v1160_v0, %v1159_v60 }
 0x15d   :  { %v1162_v58 = vshll.u32 %v4204_v52, %v1150_v12  ;;  %v1163_v36 = vshrl.u32 %v4198_v26, %v1151_v20  ;;  %v1003_v50 = vshll.u32 %v3682_v49, %v1001_v3  ;;  %v1165_v10 = vshll.u32 %v4198_v26, %v1150_v12 }
 0x15e   :  { %v1166_v4 = vshrl.u32 %v4199_v5, %v1151_v20  ;;  %vm1171_vm2 = vcmp.lt.s32.totalorder %v3713_v15, 4  ;;  %v3751_v43 = vshrl.u32 %v1300_v59, 30  ;;  %v1152_v2 = vshrl.u32 %v4200_v53, %v1151_v20 }
 0x15f   :  { %v1164_v30 = vor.u32 %v1163_v36, %v1162_v58  ;;  %v1173_v33 = vsel %vm1171_vm2, %v1161_v16, 2102212464  ;;  %v1004_v19 = vshrl.u32 %v986_v37, %v1002_v13  ;;  %v1009_v52 = vor.u32 4788187, %v1008_v21 }
 0x160   :  { %v1167_v39 = vor.u32 %v1166_v4, %v1165_v10  ;;  %v1176_v49 = vsel %vm1168_vm13, %v1155_v7, %v1158_v14  ;;  %v1302_v26 = vshll.u32 %v3751_v43, 30  ;;  %v1180_v12 = vsel %vm1168_vm13, %v1158_v14, %v1161_v16 }
 0x161   :  { %v1177_v5 = vsel %vm1171_vm2, %v1164_v30, 920167782  ;;  %2848 = vcosq.f32 %v194_v40  ;;  %v1172_v53 = vsel %vm1168_vm13, %v1152_v2, %v1155_v7  ;;  %v1174_v37 = vsel %vm1170_vm0, %v1158_v14, %v1173_v33 }
 0x162   :  { %v1178_v3 = vsel %vm1170_vm0, %v1161_v16, %v1177_v5  ;;  %v1181_v20 = vsel %vm1171_vm2, %v1167_v39, 1326507024  ;;  %vm829_vm6 = vcmp.lt.s32.totalorder %v3265_v34, 0  ;;  %vm726_vm8 = vcmp.lt.s32.totalorder %v3333_v47, 0 }
 0x163   :  { %v3773_v35 = vsub.s32 %v1299_v17, %v1302_v26  ;;  %v1179_v9 = vsel %vm1169_vm15, %v1176_v49, %v1178_v3  ;;  %v1182_v45 = vsel %vm1170_vm0, %v1164_v30, %v1181_v20  ;;  %2850 = vsinq.f32 %v194_v40 }
 0x164   :  { %v1005_v11 = vor.u32 %v1004_v19, %v1003_v50  ;;  %v1183_v60 = vsel %vm1169_vm15, %v1180_v12, %v1182_v45  ;;  %v3782_v0 = vmul.u32.u64.low %v3717_v48, %v1179_v9  ;;  %v3783_v13 = vmul.u32.u64.high %v3717_v48, %v1179_v9, %v3782_v0 }
 0x165   :  { %vm4192_vm9 = vcmp.lt.s32.totalorder %v3448_v18, 0  ;;  %v1116_v17 = vmul.f32 %v1115_v56, %v1113_v57  ;;  %v1305_v21 = vsub.s32 0, %v3773_v35  ;;  %v3797_v40 = vsel %vm520_vm1, %v602_v1, %v3577_v31 }
 0x166   :  { %v3789_v7 = vmul.u32.u64.low %v3717_v48, %v1183_v60  ;;  %v3790_v14 = vmul.u32.u64.high %v3717_v48, %v1183_v60, %v3789_v7  ;;  %v911_v59 = vxor.u32 2147483648, %v3662_v44  ;;  %v1010_v16 = vand.u32 2147483647, %v1009_v52 }
 0x167   :  { %v1175_v58 = vsel %vm1169_vm15, %v1172_v53, %v1174_v37  ;;  %v2736_v56 = vmin.u32 %v1305_v21, %v3773_v35  ;;  %v195_v57 = vsel %vm3692_vm5, 0, %v3722_v62  ;;  %v4212_v36 = vand.u32 2147483647, %v3063_v51 }
 0x168   :  { %v295_v31 = vsub.s32 4, %v3274_v23  ;;  %v808_v1 = vxor.u32 2147483648, %v3666_v22  ;;  %v1012_v10 = vcvt.s32.f32 %v1005_v11  ;;  %v1194_v15 = vadd.s32 1, %v3783_v13 }
 0x169   :  { %vm3808_vm10 = vcmp.le.f32.partialorder %v4212_v36, 0.7853982  ;;  %v1117_v6 = vxor.u32 2147483648, %v1116_v17  ;;  %v1307_v62 = vclz %v2736_v56  ;;  %v1191_v2 = vmul.u32 %v3717_v48, %v1175_v58 }
 0x16a   :  { %v297_v4 = vsel %vm3808_vm10, %v3063_v51, %v3521_v46  ;;  %vm1193_vm5 = vc.u32 %v3790_v14, %v3782_v0  ;;  %v3822_v30 = vmul.f32 %v1012_v10, %v1010_v16  ;;  %v199_v19 = vand.u32 3, %v195_v57 }
 0x16b   :  { %v1195_v33 = vsel %vm1193_vm5, %v1194_v15, %v3783_v13  ;;  %v1435_v52 = vadd.s32 3, %v195_v57  ;;  %v2737_v39 = vadd.s32 4294967294, %v1307_v62  ;;  %v296_v26 = vsel %vm211_vm7, %v295_v31, %v3274_v23  ;;  %v2897_v62 = vld [vmem:[%s4154_s2] sm:$0xff] }
 0x16c   :  { %v1196_v49 = vadd.s32 %v1195_v33, %v1191_v2  ;;  %2852 = vcosq.f32 %v297_v4  ;;  %v3831_v46 = vsel %vm829_vm6, %v911_v59, %v3662_v44  ;;  %v3836_v48 = vsel %vm726_vm8, %v808_v1, %v3666_v22 }
 0x16d   :  { %2854 = vsinq.f32 %v297_v4  ;;  %v4215_v5 = vand.u32 2147483647, %v3040_v28  ;;  %vm2738_vm11 = vcmp.lt.s32.totalorder %v2737_v39, 0  ;;  %vm198_vm7 = vweird.f32 %v3043_v29 }
 0x16e   :  { %v1197_v23 = vadd.s32 536870912, %v1196_v49  ;;  %v2849_v53 = vpop.eup %2848  ;;  %v3851_v22 = vsel %vm4192_vm9, %v1117_v6, %v1116_v17  ;;  %v1295_v37 = vadd.s32 %v3705_v27, %v3711_v41  ;;  %v1436_v3 = vand.u32 3, %v1435_v52  ;;  %v2603_v52 = vpop.permute.xlu0 %2602 }
 0x16f   :  { %vm3840_vm12 = vcmp.le.f32.partialorder %v4215_v5, 0.7853982  ;;  %v298_v20 = vsel %vm3808_vm10, 0, %v296_v26  ;;  %v1014_v9 = vxor.u32 2147483648, %v3822_v30  ;;  %v3858_v45 = vsel %vm2738_vm11, 0, %v2737_v39 }
 0x170   :  { %v400_v44 = vsel %vm3840_vm12, %v3040_v28, %v3377_v63  ;;  %v3860_v11 = vshrl.u32 %v1197_v23, 30  ;;  %vm200_vm13 = vcmp.lt.s32.totalorder %v199_v19, 2  ;;  %v2851_v63 = vpop.eup %2850  ;;  %vm201_vm15 = vcmp.eq.s32.totalorder %v199_v19, 0 }
 0x171   :  { %vm204_vm0 = vcmp.eq.s32.totalorder %v199_v19, 2  ;;  %v205_v60 = vxor.u32 2147483648, %v2849_v53  ;;  %2856 = vcosq.f32 %v400_v44  ;;  %v202_v17 = vxor.u32 2147483648, %v2851_v63 }
 0x172   :  { %v1199_v13 = vshll.u32 %v3860_v11, 30  ;;  %v1539_v27 = vadd.s32 3, %v298_v20  ;;  %v398_v41 = vsub.s32 4, %v3143_v42  ;;  %v1315_v21 = vsub.s32 4294967266, %v3858_v45 }
 0x173   :  { %v206_v7 = vsel %vm204_vm0, %v205_v60, %v2851_v63  ;;  %vm1438_vm2 = vcmp.eq.s32.totalorder %v1436_v3, 0  ;;  %vm1441_vm10 = vcmp.eq.s32.totalorder %v1436_v3, 2  ;;  %v203_v16 = vsel %vm201_vm15, %v2849_v53, %v202_v17 }
 0x174   :  { %v3865_v59 = vsub.s32 %v1196_v49, %v1199_v13  ;;  %v1443_v58 = vsel %vm1441_vm10, %v205_v60, %v2851_v63  ;;  %v302_v56 = vand.u32 3, %v298_v20  ;;  %v1311_v57 = vsub.s32 32, %v3858_v45 }
 0x175   :  { %v207_v36 = vsel %vm200_vm13, %v203_v16, %v206_v7  ;;  %vm1437_vm5 = vcmp.lt.s32.totalorder %v1436_v3, 2  ;;  %v1440_v50 = vsel %vm1438_vm2, %v2849_v53, %v202_v17  ;;  %vm301_vm11 = vweird.f32 %v3063_v51 }
 0x176   :  { %v1202_v31 = vsub.s32 0, %v3865_v59  ;;  %v208_v1 = vsel %vm198_vm7, nan, %v207_v36  ;;  %v1540_v10 = vand.u32 3, %v1539_v27  ;;  %v399_v15 = vsel %vm314_vm3, %v398_v41, %v3143_v42 }
 0x177   :  { %v1316_v4 = vadd.s32 127, %v1315_v21  ;;  %v1444_v6 = vsel %vm1437_vm5, %v1440_v50, %v1443_v58  ;;  %v2626_v2 = vmul.f32 %v2897_v62, %v208_v1  ;;  %2858 = vsinq.f32 %v400_v44  ;;  %v2605_v50 = vpop.permute.xlu1 %2604 }
 0x178   :  { %v2732_v33 = vmin.u32 %v1202_v31, %v3865_v59  ;;  %v1445_v19 = vsel %vm198_vm7, nan, %v1444_v6  ;;  %vm303_vm13 = vcmp.lt.s32.totalorder %v302_v56, 2  ;;  %vm304_vm15 = vcmp.eq.s32.totalorder %v302_v56, 0 }
 0x179   :  { %v2853_v39 = vpop.eup %2852  ;;  %v1312_v42 = vshll.u32 %v3773_v35, %v3858_v45  ;;  %v2638_v49 = vmul.f32 %v2603_v52, %v1445_v19  ;;  %vm307_vm3 = vcmp.eq.s32.totalorder %v302_v56, 2  ;;  %v401_v26 = vsel %vm3840_vm12, 0, %v399_v15  ;;  %v2898_v56 = vld [vmem:[%s4154_s2 + $0x8] sm:$0xff] }
 0x17a   :  { %v2855_v5 = vpop.eup %2854  ;;  %v1313_v23 = vshrl.u32 %v1295_v37, %v1311_v57  ;;  %v1204_v44 = vclz %v2732_v33  ;;  %v308_v53 = vxor.u32 2147483648, %v2853_v39  ;;  %vm1542_vm0 = vcmp.eq.s32.totalorder %v1540_v10, 0 }
 0x17b   :  { %v1317_v3 = vshll.u32 %v1316_v4, 23  ;;  %v2650_v29 = vadd.f32 %v2638_v49, %v2626_v2  ;;  %v305_v20 = vxor.u32 2147483648, %v2855_v5  ;;  %vm1545_vm7 = vcmp.eq.s32.totalorder %v1540_v10, 2 }
 0x17c   :  { %v2733_v63 = vadd.s32 4294967294, %v1204_v44  ;;  %v309_v60 = vsel %vm307_vm3, %v308_v53, %v2855_v5  ;;  %v1547_v13 = vsel %vm1545_vm7, %v308_v53, %v2855_v5  ;;  %v1643_v17 = vadd.s32 3, %v401_v26  ;;  %v2607_v44 = vpop.permute.xlu0 %2606 }
 0x17d   :  { %2662 = vst [vmem:[#allocation2] sm:$0xff] %v2650_v29  ;;  %v306_v35 = vsel %vm304_vm15, %v2853_v39, %v305_v20  ;;  %vm1541_vm2 = vcmp.lt.s32.totalorder %v1540_v10, 2  ;;  %v1544_v45 = vsel %vm1542_vm0, %v2853_v39, %v305_v20  ;;  %v501_v12 = vsub.s32 4, %v3207_v24 }
 0x17e   :  { %v2857_v27 = vpop.eup %2856  ;;  %v1314_v37 = vor.u32 %v1313_v23, %v1312_v42  ;;  %vm2734_vm12 = vcmp.lt.s32.totalorder %v2733_v63, 0  ;;  %v310_v41 = vsel %vm303_vm13, %v306_v35, %v309_v60  ;;  %v1548_v21 = vsel %vm1541_vm2, %v1544_v45, %v1547_v13 }
 0x17f   :  { %v1318_v7 = vor.u32 4788187, %v1317_v3  ;;  %v3889_v16 = vsel %vm2734_vm12, 0, %v2733_v63  ;;  %v311_v58 = vsel %vm301_vm11, nan, %v310_v41  ;;  %v1549_v57 = vsel %vm301_vm11, nan, %v1548_v21  ;;  %v4219_v63 = vld [vmem:[#allocation6_spill] sm:$0xff] }
 0x180   :  { %vm4191_vm10 = vcmp.lt.s32.totalorder %v3514_v54, 0  ;;  %v1212_v36 = vsub.s32 4294967266, %v3889_v16  ;;  %v2627_v31 = vmul.f32 %v2898_v56, %v311_v58  ;;  %v405_v1 = vand.u32 3, %v401_v26  ;;  %v4220_v21 = vld [vmem:[#allocation5_spill] sm:$0xff] }
 0x181   :  { %v1644_v10 = vand.u32 3, %v1643_v17  ;;  %v2639_v15 = vmul.f32 %v2605_v50, %v1549_v57  ;;  %v411_v4 = vxor.u32 2147483648, %v2857_v27  ;;  %v4218_v6 = vand.u32 2147483647, %v3054_v38  ;;  %v4222_v57 = vld [vmem:[#allocation10_spill] sm:$0xff] }
 0x182   :  { %v502_v51 = vsel %vm417_vm4, %v501_v12, %v3207_v24  ;;  %v1321_v62 = vcvt.s32.f32 %v1314_v37  ;;  %v1192_v2 = vadd.s32 %v3782_v0, %v3790_v14  ;;  %vm404_vm11 = vweird.f32 %v3040_v28  ;;  %v2899_v12 = vld [vmem:[%s4154_s2 + $0x10] sm:$0xff] }
 0x183   :  { %vm416_vm5 = vcmp.le.f32.partialorder %v4218_v6, 0.7853982  ;;  %v1319_v19 = vand.u32 2147483647, %v1318_v7  ;;  %v1213_v52 = vadd.s32 127, %v1212_v36  ;;  %v2651_v39 = vadd.f32 %v2639_v15, %v2627_v31  ;;  %v4226_v15 = vld [vmem:[#allocation7_spill] sm:$0xff] }
 0x184   :  { %v503_v33 = vsel %vm416_vm5, %v3054_v38, %v3500_v25  ;;  %v2859_v42 = vpop.eup %2858  ;;  %vm410_vm13 = vcmp.eq.s32.totalorder %v405_v1, 2  ;;  %vm1649_vm15 = vcmp.eq.s32.totalorder %v1644_v10, 2  ;;  %v504_v49 = vsel %vm416_vm5, 0, %v502_v51 }
 0x185   :  { %2860 = vcosq.f32 %v503_v33  ;;  %v1208_v24 = vsub.s32 32, %v3889_v16  ;;  %2663 = vst [vmem:[#allocation2 + $0x8] sm:$0xff] %v2651_v39  ;;  %v408_v26 = vxor.u32 2147483648, %v2859_v42  ;;  %v412_v5 = vsel %vm410_vm13, %v411_v4, %v2859_v42  ;;  %v4230_v39 = vld [vmem:[#allocation8_spill] sm:$0xff] }
 0x186   :  { %2862 = vsinq.f32 %v503_v33  ;;  %v1651_v0 = vsel %vm1649_vm15, %v411_v4, %v2859_v42  ;;  %vm406_vm4 = vcmp.lt.s32.totalorder %v405_v1, 2  ;;  %vm407_vm3 = vcmp.eq.s32.totalorder %v405_v1, 0 }
 0x187   :  { %vm1645_vm0 = vcmp.lt.s32.totalorder %v1644_v10, 2  ;;  %vm1646_vm7 = vcmp.eq.s32.totalorder %v1644_v10, 0  ;;  %v1214_v25 = vshll.u32 %v1213_v52, 23  ;;  %v409_v14 = vsel %vm407_vm3, %v2857_v27, %v408_v26 }
 0x188   :  { %v1648_v23 = vsel %vm1646_vm7, %v2857_v27, %v408_v26  ;;  %v1747_v53 = vadd.s32 3, %v504_v49  ;;  %v3911_v3 = vmul.f32 %v1321_v62, %v1319_v19  ;;  %v413_v29 = vsel %vm406_vm4, %v409_v14, %v412_v5 }
 0x189   :  { %v1652_v20 = vsel %vm1645_vm0, %v1648_v23, %v1651_v0  ;;  %v707_v60 = vsub.s32 4, %v4219_v63  ;;  %v3919_v13 = vsel %vm4191_vm10, %v1014_v9, %v3822_v30  ;;  %v1210_v17 = vshrl.u32 %v1192_v2, %v1208_v24 }
 0x18a   :  { %v414_v35 = vsel %vm404_vm11, nan, %v413_v29  ;;  %v1653_v45 = vsel %vm404_vm11, nan, %v1652_v20  ;;  %v508_v41 = vand.u32 3, %v504_v49  ;;  %v4221_v7 = vand.u32 2147483647, %v4220_v21 }
 0x18b   :  { %v2628_v27 = vmul.f32 %v2899_v12, %v414_v35  ;;  %v2640_v37 = vmul.f32 %v2607_v44, %v1653_v45  ;;  %v3930_v58 = vor.u32 4788187, %v1214_v25  ;;  %v1748_v30 = vand.u32 3, %v1747_v53  ;;  %v2609_v53 = vpop.permute.xlu1 %2608  ;;  %v2900_v45 = vld [vmem:[%s4154_s2 + $0x18] sm:$0xff] }
 0x18c   :  { %vm622_vm2 = vcmp.le.f32.partialorder %v4221_v7, 0.7853982  ;;  %v708_v9 = vsel %vm623_vm14, %v707_v60, %v4219_v63  ;;  %v1323_v36 = vxor.u32 2147483648, %v3911_v3  ;;  %v1209_v50 = vshll.u32 %v3865_v59, %v3889_v16 }
 0x18d   :  { %v709_v28 = vsel %vm622_vm2, %v4220_v21, %v4222_v57  ;;  %v2652_v56 = vadd.f32 %v2640_v37, %v2628_v27  ;;  %v710_v31 = vsel %vm622_vm2, 0, %v708_v9  ;;  %v4223_v1 = vand.u32 2147483647, %v3250_v8 }
 0x18e   :  { %2864 = vcosq.f32 %v709_v28  ;;  %v604_v4 = vsub.s32 4, %v4226_v15  ;;  %v3947_v6 = vor.u32 %v1210_v17, %v1209_v50  ;;  %vm507_vm14 = vweird.f32 %v3054_v38  ;;  %v4234_v50 = vld [vmem:[#allocation9_spill] sm:$0xff] }
 0x18f   :  { %2866 = vsinq.f32 %v709_v28  ;;  %vm3942_vm12 = vcmp.le.f32.partialorder %v4223_v1, 0.7853982  ;;  %2664 = vst [vmem:[#allocation2 + $0x10] sm:$0xff] %v2652_v56  ;;  %vm509_vm5 = vcmp.lt.s32.totalorder %v508_v41, 2  ;;  %v1216_v16 = vand.u32 2147483647, %v3930_v58 }
 0x190   :  { %v606_v59 = vsel %vm3942_vm12, %v3250_v8, %v3797_v40  ;;  %vm510_vm11 = vcmp.eq.s32.totalorder %v508_v41, 0  ;;  %vm513_vm13 = vcmp.eq.s32.totalorder %v508_v41, 2  ;;  %vm1749_vm15 = vcmp.lt.s32.totalorder %v1748_v30, 2 }
 0x191   :  { %v1955_v62 = vadd.s32 3, %v710_v31  ;;  %v605_v2 = vsel %vm520_vm1, %v604_v4, %v4226_v15  ;;  %2868 = vcosq.f32 %v606_v59  ;;  %v4227_v33 = vand.u32 2147483647, %v3265_v34 }
 0x192   :  { %v2861_v51 = vpop.eup %2860  ;;  %vm1753_vm3 = vcmp.eq.s32.totalorder %v1748_v30, 2  ;;  %v913_v42 = vsub.s32 4, %v4230_v39  ;;  %v714_v26 = vand.u32 3, %v710_v31  ;;  %v607_v5 = vsel %vm3942_vm12, 0, %v605_v2  ;;  %v2613_v2 = vpop.permute.xlu1 %2612 }
 0x193   :  { %vm3960_vm4 = vcmp.le.f32.partialorder %v4227_v33, 0.7853982  ;;  %v2863_v52 = vpop.eup %2862  ;;  %v514_v40 = vxor.u32 2147483648, %v2861_v51  ;;  %2870 = vsinq.f32 %v606_v59  ;;  %vm1750_vm1 = vcmp.eq.s32.totalorder %v1748_v30, 0 }
 0x194   :  { %v915_v49 = vsel %vm3960_vm4, %v3265_v34, %v3831_v46  ;;  %v511_v24 = vxor.u32 2147483648, %v2863_v52  ;;  %v1851_v14 = vadd.s32 3, %v607_v5  ;;  %v1956_v29 = vand.u32 3, %v1955_v62 }
 0x195   :  { %v515_v0 = vsel %vm513_vm13, %v514_v40, %v2863_v52  ;;  %v1755_v25 = vsel %vm1753_vm3, %v514_v40, %v2863_v52  ;;  %2872 = vcosq.f32 %v915_v49  ;;  %v3975_v63 = vand.u32 3, %v607_v5 }
 0x196   :  { %v512_v23 = vsel %vm510_vm11, %v2861_v51, %v511_v24  ;;  %v1752_v44 = vsel %vm1750_vm1, %v2861_v51, %v511_v24  ;;  %v914_v60 = vsel %vm829_vm6, %v913_v42, %v4230_v39  ;;  %vm713_vm0 = vweird.f32 %v4220_v21 }
 0x197   :  { %v516_v20 = vsel %vm509_vm5, %v512_v23, %v515_v0  ;;  %v1756_v46 = vsel %vm1749_vm15, %v1752_v44, %v1755_v25  ;;  %vm715_vm7 = vcmp.lt.s32.totalorder %v714_v26, 2  ;;  %v1852_v37 = vand.u32 3, %v1851_v14 }
 0x198   :  { %v517_v17 = vsel %vm507_vm14, nan, %v516_v20  ;;  %v1757_v35 = vsel %vm507_vm14, nan, %v1756_v46  ;;  %2874 = vsinq.f32 %v915_v49  ;;  %vm716_vm2 = vcmp.eq.s32.totalorder %v714_v26, 0  ;;  %v2611_v46 = vpop.permute.xlu0 %2610 }
 0x199   :  { %v2629_v12 = vmul.f32 %v2900_v45, %v517_v17  ;;  %v2641_v27 = vmul.f32 %v2609_v53, %v1757_v35  ;;  %vm719_vm12 = vcmp.eq.s32.totalorder %v714_v26, 2  ;;  %vm1957_vm6 = vcmp.lt.s32.totalorder %v1956_v29, 2  ;;  %v2901_v26 = vld [vmem:[%s4154_s2 + $0x28] sm:$0xff] }
 0x19a   :  { %v916_v41 = vsel %vm3960_vm4, 0, %v914_v60  ;;  %vm1958_vm14 = vcmp.eq.s32.totalorder %v1956_v29, 0  ;;  %vm1961_vm5 = vcmp.eq.s32.totalorder %v1956_v29, 2  ;;  %vm613_vm11 = vcmp.eq.s32.totalorder %v3975_v63, 0 }
 0x19b   :  { %v2865_v7 = vpop.eup %2864  ;;  %v2653_v38 = vadd.f32 %v2641_v27, %v2629_v12  ;;  %vm612_vm13 = vcmp.lt.s32.totalorder %v3975_v63, 2  ;;  %vm616_vm15 = vcmp.eq.s32.totalorder %v3975_v63, 2  ;;  %v4231_v57 = vand.u32 2147483647, %v3333_v47 }
 0x19c   :  { %v2867_v30 = vpop.eup %2866  ;;  %v720_v9 = vxor.u32 2147483648, %v2865_v7  ;;  %v810_v56 = vsub.s32 4, %v4234_v50  ;;  %vm610_vm4 = vweird.f32 %v3250_v8  ;;  %vm1853_vm1 = vcmp.lt.s32.totalorder %v1852_v37, 2 }
 0x19d   :  { %vm3995_vm3 = vcmp.le.f32.partialorder %v4231_v57, 0.7853982  ;;  %2665 = vst [vmem:[#allocation2 + $0x18] sm:$0xff] %v2653_v38  ;;  %v717_v31 = vxor.u32 2147483648, %v2867_v30  ;;  %v2163_v1 = vadd.s32 3, %v916_v41  ;;  %vm1854_vm10 = vcmp.eq.s32.totalorder %v1852_v37, 0 }
 0x19e   :  { %v812_v10 = vsel %vm3995_vm3, %v3333_v47, %v3836_v48  ;;  %v721_v15 = vsel %vm719_vm12, %v720_v9, %v2867_v30  ;;  %v1963_v4 = vsel %vm1961_vm5, %v720_v9, %v2867_v30  ;;  %v2869_v59 = vpop.eup %2868  ;;  %vm1857_vm9 = vcmp.eq.s32.totalorder %v1852_v37, 2 }
 0x19f   :  { %2876 = vcosq.f32 %v812_v10  ;;  %v718_v51 = vsel %vm716_vm2, %v2865_v7, %v717_v31  ;;  %v1960_v62 = vsel %vm1958_vm14, %v2865_v7, %v717_v31  ;;  %v920_v33 = vand.u32 3, %v916_v41  ;;  %v2902_v7 = vld [vmem:[%s4154_s2 + $0x20] sm:$0xff] }
 0x1a0   :  { %v722_v19 = vsel %vm715_vm7, %v718_v51, %v721_v15  ;;  %v1964_v52 = vsel %vm1957_vm6, %v1960_v62, %v1963_v4  ;;  %v617_v40 = vxor.u32 2147483648, %v2869_v59  ;;  %v811_v48 = vsel %vm726_vm8, %v810_v56, %v4234_v50  ;;  %v2871_v39 = vpop.eup %2870 }
 0x1a1   :  { %v723_v42 = vsel %vm713_vm0, nan, %v722_v19  ;;  %v1965_v49 = vsel %vm713_vm0, nan, %v1964_v52  ;;  %v2164_v24 = vand.u32 3, %v2163_v1  ;;  %2878 = vsinq.f32 %v812_v10  ;;  %v2617_v1 = vpop.permute.xlu1 %2616  ;;  %v4238_v10 = vld [vmem:[#allocation11_spill] sm:$0xff] }
 0x1a2   :  { %v2631_v5 = vmul.f32 %v2901_v26, %v723_v42  ;;  %v2643_v0 = vmul.f32 %v2613_v2, %v1965_v49  ;;  %v614_v25 = vxor.u32 2147483648, %v2871_v39  ;;  %v618_v14 = vsel %vm616_vm15, %v617_v40, %v2871_v39  ;;  %v2873_v23 = vpop.eup %2872  ;;  %v2905_v49 = vld [vmem:[%s4154_s2 + $0x48] sm:$0xff] }
 0x1a3   :  { %vm919_vm8 = vweird.f32 %v3265_v34  ;;  %v1859_v44 = vsel %vm1857_vm9, %v617_v40, %v2871_v39  ;;  %vm921_vm7 = vcmp.lt.s32.totalorder %v920_v33, 2  ;;  %vm922_vm2 = vcmp.eq.s32.totalorder %v920_v33, 0  ;;  %v2903_v40 = vld [vmem:[%s4154_s2 + $0x38] sm:$0xff] }
 0x1a4   :  { %v813_v21 = vsel %vm3995_vm3, 0, %v811_v48  ;;  %v2655_v53 = vadd.f32 %v2643_v0, %v2631_v5  ;;  %v615_v29 = vsel %vm613_vm11, %v2869_v59, %v614_v25  ;;  %v1856_v20 = vsel %vm1854_vm10, %v2869_v59, %v614_v25 }
 0x1a5   :  { %v926_v60 = vxor.u32 2147483648, %v2873_v23  ;;  %v619_v17 = vsel %vm612_vm13, %v615_v29, %v618_v14  ;;  %v1860_v35 = vsel %vm1853_vm1, %v1856_v20, %v1859_v44  ;;  %vm925_vm0 = vcmp.eq.s32.totalorder %v920_v33, 2  ;;  %v2875_v45 = vpop.eup %2874 }
 0x1a6   :  { %vm2165_vm9 = vcmp.lt.s32.totalorder %v2164_v24, 2  ;;  %2667 = vst [vmem:[#allocation2 + $0x28] sm:$0xff] %v2655_v53  ;;  %v620_v12 = vsel %vm610_vm4, nan, %v619_v17  ;;  %v1861_v27 = vsel %vm610_vm4, nan, %v1860_v35  ;;  %vm2169_vm12 = vcmp.eq.s32.totalorder %v2164_v24, 2  ;;  %v2904_v35 = vld [vmem:[%s4154_s2 + $0x30] sm:$0xff] }
 0x1a7   :  { %v2059_v41 = vadd.s32 3, %v813_v21  ;;  %v2630_v63 = vmul.f32 %v2902_v7, %v620_v12  ;;  %v2642_v38 = vmul.f32 %v2611_v46, %v1861_v27  ;;  %v923_v37 = vxor.u32 2147483648, %v2875_v45 }
 0x1a8   :  { %v927_v30 = vsel %vm925_vm0, %v926_v60, %v2875_v45  ;;  %vm2166_vm10 = vcmp.eq.s32.totalorder %v2164_v24, 0  ;;  %v2171_v9 = vsel %vm2169_vm12, %v926_v60, %v2875_v45  ;;  %v817_v57 = vand.u32 3, %v813_v21  ;;  %v2615_v21 = vpop.permute.xlu0 %2614 }
 0x1a9   :  { %v4235_v28 = vand.u32 2147483647, %v3448_v18  ;;  %v2654_v8 = vadd.f32 %v2642_v38, %v2630_v63  ;;  %v924_v56 = vsel %vm922_vm2, %v2873_v23, %v923_v37  ;;  %v2168_v31 = vsel %vm2166_vm10, %v2873_v23, %v923_v37 }
 0x1aa   :  { %v1119_v15 = vsub.s32 4, %v4238_v10  ;;  %v928_v4 = vsel %vm921_vm7, %v924_v56, %v927_v30  ;;  %v2172_v59 = vsel %vm2165_vm9, %v2168_v31, %v2171_v9  ;;  %v2060_v51 = vand.u32 3, %v2059_v41 }
 0x1ab   :  { %vm4041_vm6 = vcmp.le.f32.partialorder %v4235_v28, 0.7853982  ;;  %vm1241_vm14 = vcmp.lt.s32.totalorder %v3581_v61, 0  ;;  %v1218_v19 = vcvt.s32.f32 %v3947_v6  ;;  %2666 = vst [vmem:[#allocation2 + $0x20] sm:$0xff] %v2654_v8  ;;  %v929_v52 = vsel %vm919_vm8, nan, %v928_v4 }
 0x1ac   :  { %v1121_v62 = vsel %vm4041_vm6, %v3448_v18, %v3851_v22  ;;  %v2877_v2 = vpop.eup %2876  ;;  %v2173_v33 = vsel %vm919_vm8, nan, %v2172_v59  ;;  %v2633_v48 = vmul.f32 %v2903_v40, %v929_v52  ;;  %vm4239_vm5 = vcmp.lt.s32.totalorder %v3448_v18, 0 }
 0x1ad   :  { %2880 = vcosq.f32 %v1121_v62  ;;  %v2645_v39 = vmul.f32 %v2617_v1, %v2173_v33  ;;  %v823_v22 = vxor.u32 2147483648, %v2877_v2  ;;  %v1120_v42 = vsel %vm4239_vm5, %v1119_v15, %v4238_v10 }
 0x1ae   :  { %v1219_v6 = vmul.f32 %v1218_v19, %v1216_v16  ;;  %vm822_vm11 = vcmp.eq.s32.totalorder %v817_v57, 2  ;;  %2882 = vsinq.f32 %v1121_v62  ;;  %v4240_v34 = vand.u32 2147483647, %v3514_v54  ;;  %v2879_v24 = vpop.eup %2878  ;;  %v2621_v19 = vpop.permute.xlu1 %2620 }
 0x1af   :  { %v2657_v26 = vadd.f32 %v2645_v39, %v2633_v48  ;;  %vm2065_vm15 = vcmp.eq.s32.totalorder %v2060_v51, 2  ;;  %v1016_v5 = vsub.s32 4, %v3670_v32  ;;  %v820_v58 = vxor.u32 2147483648, %v2879_v24 }
 0x1b0   :  { %vm4069_vm13 = vcmp.le.f32.partialorder %v4240_v34, 0.7853982  ;;  %v824_v16 = vsel %vm822_vm11, %v823_v22, %v2879_v24  ;;  %v2067_v25 = vsel %vm2065_vm15, %v823_v22, %v2879_v24  ;;  %v1122_v14 = vsel %vm4041_vm6, 0, %v1120_v42 }
 0x1b1   :  { %v1018_v0 = vsel %vm4069_vm13, %v3514_v54, %v3919_v13  ;;  %2669 = vst [vmem:[#allocation2 + $0x38] sm:$0xff] %v2657_v26  ;;  %vm816_vm3 = vweird.f32 %v3333_v47  ;;  %vm818_vm4 = vcmp.lt.s32.totalorder %v817_v57, 2  ;;  %vm819_vm1 = vcmp.eq.s32.totalorder %v817_v57, 0 }
 0x1b2   :  { %vm2062_vm8 = vcmp.eq.s32.totalorder %v2060_v51, 0  ;;  %v821_v23 = vsel %vm819_vm1, %v2877_v2, %v820_v58  ;;  %vm2061_vm7 = vcmp.lt.s32.totalorder %v2060_v51, 2  ;;  %2884 = vcosq.f32 %v1018_v0 }
 0x1b3   :  { %v2064_v44 = vsel %vm2062_vm8, %v2877_v2, %v820_v58  ;;  %v825_v53 = vsel %vm818_vm4, %v821_v23, %v824_v16  ;;  %v2371_v13 = vadd.s32 3, %v1122_v14  ;;  %vm4243_vm2 = vcmp.lt.s32.totalorder %v3514_v54, 0 }
 0x1b4   :  { %v2068_v29 = vsel %vm2061_vm7, %v2064_v44, %v2067_v25  ;;  %v1017_v20 = vsel %vm4243_vm2, %v1016_v5, %v3670_v32  ;;  %v1220_v46 = vxor.u32 2147483648, %v1219_v6  ;;  %v826_v60 = vsel %vm816_vm3, nan, %v825_v53 }
 0x1b5   :  { %v2069_v17 = vsel %vm816_vm3, nan, %v2068_v29  ;;  %2886 = vsinq.f32 %v1018_v0  ;;  %v1324_v47 = vsel %vm1241_vm14, %v1323_v36, %v3911_v3  ;;  %v2632_v45 = vmul.f32 %v2904_v35, %v826_v60  ;;  %v2906_v60 = vld [vmem:[%s4154_s2 + $0x40] sm:$0xff] }
 0x1b6   :  { %v2644_v12 = vmul.f32 %v2615_v21, %v2069_v17  ;;  %v1126_v27 = vand.u32 3, %v1122_v14  ;;  %v1019_v32 = vsel %vm4069_vm13, 0, %v1017_v20  ;;  %v1325_v41 = vsub.s32 4, %v3751_v43  ;;  %v2619_v14 = vpop.permute.xlu0 %2618 }
 0x1b7   :  { %vm1138_vm0 = vcmp.lt.s32.totalorder %v3592_v55, 0  ;;  %v2372_v63 = vand.u32 3, %v2371_v13  ;;  %v4244_v38 = vand.u32 2147483647, %v3581_v61  ;;  %vm1125_vm12 = vweird.f32 %v3448_v18 }
 0x1b8   :  { %v2656_v7 = vadd.f32 %v2644_v12, %v2632_v45  ;;  %v1221_v36 = vsel %vm1138_vm0, %v1220_v46, %v1219_v6  ;;  %vm1127_vm10 = vcmp.lt.s32.totalorder %v1126_v27, 2  ;;  %v2267_v9 = vadd.s32 3, %v1019_v32 }
 0x1b9   :  { %vm4098_vm9 = vcmp.le.f32.partialorder %v4244_v38, 0.7853982  ;;  %v1326_v57 = vsel %vm1241_vm14, %v1325_v41, %v3751_v43  ;;  %vm1131_vm6 = vcmp.eq.s32.totalorder %v1126_v27, 2  ;;  %v1023_v50 = vand.u32 3, %v1019_v32 }
 0x1ba   :  { %v1327_v37 = vsel %vm4098_vm9, %v3581_v61, %v1324_v47  ;;  %v2881_v30 = vpop.eup %2880  ;;  %2668 = vst [vmem:[#allocation2 + $0x30] sm:$0xff] %v2656_v7  ;;  %v4247_v8 = vand.u32 2147483647, %v3592_v55  ;;  %vm2377_vm11 = vcmp.eq.s32.totalorder %v2372_v63, 2  ;;  %v1222_v1 = vsub.s32 4, %v3860_v11 }
 0x1bb   :  { %2888 = vcosq.f32 %v1327_v37  ;;  %v1132_v28 = vxor.u32 2147483648, %v2881_v30  ;;  %v2883_v31 = vpop.eup %2882  ;;  %v1328_v59 = vsel %vm4098_vm9, 0, %v1326_v57  ;;  %vm1128_vm14 = vcmp.eq.s32.totalorder %v1126_v27, 0 }
 0x1bc   :  { %vm4113_vm5 = vcmp.le.f32.partialorder %v4247_v8, 0.7853982  ;;  %2890 = vsinq.f32 %v1327_v37  ;;  %v1129_v43 = vxor.u32 2147483648, %v2883_v31  ;;  %vm2373_vm13 = vcmp.lt.s32.totalorder %v2372_v63, 2  ;;  %v2907_v8 = vld [vmem:[%s4154_s2 + $0x58] sm:$0xff] }
 0x1bd   :  { %v1224_v10 = vsel %vm4113_vm5, %v3592_v55, %v1221_v36  ;;  %v1133_v15 = vsel %vm1131_vm6, %v1132_v28, %v2883_v31  ;;  %v2379_v4 = vsel %vm2377_vm11, %v1132_v28, %v2883_v31  ;;  %vm2374_vm15 = vcmp.eq.s32.totalorder %v2372_v63, 0  ;;  %v2625_v36 = vpop.permute.xlu1 %2624 }
 0x1be   :  { %v2268_v51 = vand.u32 3, %v2267_v9  ;;  %v1130_v62 = vsel %vm1128_vm14, %v2881_v30, %v1129_v43  ;;  %v2376_v2 = vsel %vm2374_vm15, %v2881_v30, %v1129_v43  ;;  %vm1024_vm3 = vcmp.lt.s32.totalorder %v1023_v50, 2 }
 0x1bf   :  { %2892 = vcosq.f32 %v1224_v10  ;;  %v2885_v52 = vpop.eup %2884  ;;  %v1134_v33 = vsel %vm1127_vm10, %v1130_v62, %v1133_v15  ;;  %v2380_v40 = vsel %vm2373_vm13, %v2376_v2, %v2379_v4  ;;  %vm1028_vm4 = vcmp.eq.s32.totalorder %v1023_v50, 2 }
 0x1c0   :  { %v2579_v48 = vadd.s32 3, %v1328_v59  ;;  %v1135_v39 = vsel %vm1125_vm12, nan, %v1134_v33  ;;  %v2381_v22 = vsel %vm1125_vm12, nan, %v2380_v40  ;;  %v1029_v42 = vxor.u32 2147483648, %v2885_v52 }
 0x1c1   :  { %v1223_v6 = vsel %vm1138_vm0, %v1222_v1, %v3860_v11  ;;  %v2635_v24 = vmul.f32 %v2905_v49, %v1135_v39  ;;  %v2647_v26 = vmul.f32 %v2621_v19, %v2381_v22  ;;  %vm2273_vm1 = vcmp.eq.s32.totalorder %v2268_v51, 2 }
 0x1c2   :  { %v2887_v34 = vpop.eup %2886  ;;  %2894 = vsinq.f32 %v1224_v10  ;;  %vm1025_vm8 = vcmp.eq.s32.totalorder %v1023_v50, 0  ;;  %vm2269_vm7 = vcmp.lt.s32.totalorder %v2268_v51, 2  ;;  %vm2270_vm2 = vcmp.eq.s32.totalorder %v2268_v51, 0 }
 0x1c3   :  { %v1026_v5 = vxor.u32 2147483648, %v2887_v34  ;;  %v1030_v0 = vsel %vm1028_vm4, %v1029_v42, %v2887_v34  ;;  %v2275_v58 = vsel %vm2273_vm1, %v1029_v42, %v2887_v34  ;;  %v2659_v18 = vadd.f32 %v2647_v26, %v2635_v24 }
 0x1c4   :  { %v1225_v16 = vsel %vm4113_vm5, 0, %v1223_v6  ;;  %v1332_v23 = vand.u32 3, %v1328_v59  ;;  %v2580_v44 = vand.u32 3, %v2579_v48  ;;  %vm1022_vm0 = vweird.f32 %v3514_v54  ;;  %v2623_v59 = vpop.permute.xlu0 %2622 }
 0x1c5   :  { %v1027_v11 = vsel %vm1025_vm8, %v2885_v52, %v1026_v5  ;;  %v2272_v25 = vsel %vm2270_vm2, %v2885_v52, %v1026_v5  ;;  %2671 = vst [vmem:[#allocation2 + $0x48] sm:$0xff] %v2659_v18  ;;  %v2475_v46 = vadd.s32 3, %v1225_v16  ;;  %v1229_v41 = vand.u32 3, %v1225_v16  ;;  %v2908_v52 = vld [vmem:[%s4154_s2 + $0x50] sm:$0xff] }
 0x1c6   :  { %v1031_v21 = vsel %vm1024_vm3, %v1027_v11, %v1030_v0  ;;  %v2276_v53 = vsel %vm2269_vm7, %v2272_v25, %v2275_v58  ;;  %vm1337_vm9 = vcmp.eq.s32.totalorder %v1332_v23, 2  ;;  %vm2585_vm12 = vcmp.eq.s32.totalorder %v2580_v44, 2 }
 0x1c7   :  { %v1032_v13 = vsel %vm1022_vm0, nan, %v1031_v21  ;;  %v2277_v20 = vsel %vm1022_vm0, nan, %v2276_v53  ;;  %vm1334_vm10 = vcmp.eq.s32.totalorder %v1332_v23, 0  ;;  %vm2582_vm6 = vcmp.eq.s32.totalorder %v2580_v44, 0 }
 0x1c8   :  { %v2889_v29 = vpop.eup %2888  ;;  %v2634_v17 = vmul.f32 %v2906_v60, %v1032_v13  ;;  %v2646_v47 = vmul.f32 %v2619_v14, %v2277_v20  ;;  %v2476_v7 = vand.u32 3, %v2475_v46  ;;  %vm1333_vm5 = vcmp.lt.s32.totalorder %v1332_v23, 2 }
 0x1c9   :  { %v1338_v35 = vxor.u32 2147483648, %v2889_v29  ;;  %v2891_v45 = vpop.eup %2890  ;;  %vm2581_vm11 = vcmp.lt.s32.totalorder %v2580_v44, 2  ;;  %vm1331_vm14 = vweird.f32 %v3581_v61  ;;  %vm1234_vm13 = vcmp.eq.s32.totalorder %v1229_v41, 2 }
 0x1ca   :  { %v2658_v12 = vadd.f32 %v2646_v47, %v2634_v17  ;;  %v1335_v27 = vxor.u32 2147483648, %v2891_v45  ;;  %vm2481_vm15 = vcmp.eq.s32.totalorder %v2476_v7, 2  ;;  %vm1231_vm3 = vcmp.eq.s32.totalorder %v1229_v41, 0 }
 0x1cb   :  { %v1339_v54 = vsel %vm1337_vm9, %v1338_v35, %v2891_v45  ;;  %v2587_v32 = vsel %vm2585_vm12, %v1338_v35, %v2891_v45  ;;  %vm2478_vm4 = vcmp.eq.s32.totalorder %v2476_v7, 0  ;;  %vm1230_vm1 = vcmp.lt.s32.totalorder %v1229_v41, 2 }
 0x1cc   :  { %v2893_v63 = vpop.eup %2892  ;;  %2670 = vst [vmem:[#allocation2 + $0x40] sm:$0xff] %v2658_v12  ;;  %v1336_v38 = vsel %vm1334_vm10, %v2889_v29, %v1335_v27  ;;  %v2584_v3 = vsel %vm2582_vm6, %v2889_v29, %v1335_v27  ;;  %vm2477_vm8 = vcmp.lt.s32.totalorder %v2476_v7, 2  ;;  %vm1228_vm7 = vweird.f32 %v3592_v55 }
 0x1cd   :  { %v1340_v37 = vsel %vm1333_vm5, %v1336_v38, %v1339_v54  ;;  %v2588_v30 = vsel %vm2581_vm11, %v2584_v3, %v2587_v32  ;;  %v1235_v9 = vxor.u32 2147483648, %v2893_v63 }
 0x1ce   :  { %v1341_v57 = vsel %vm1331_vm14, nan, %v1340_v37  ;;  %v2589_v28 = vsel %vm1331_vm14, nan, %v2588_v30 }
 0x1cf   :  { %v2895_v50 = vpop.eup %2894  ;;  %v2637_v56 = vmul.f32 %v2907_v8, %v1341_v57  ;;  %v2649_v31 = vmul.f32 %v2625_v36, %v2589_v28 }
 0x1d0   :  { %v1232_v1 = vxor.u32 2147483648, %v2895_v50  ;;  %v1236_v10 = vsel %vm1234_vm13, %v1235_v9, %v2895_v50  ;;  %v2483_v43 = vsel %vm2481_vm15, %v1235_v9, %v2895_v50 }
 0x1d1   :  { %v2661_v15 = vadd.f32 %v2649_v31, %v2637_v56 }
 0x1d2   :  { %v1233_v61 = vsel %vm1231_vm3, %v2893_v63, %v1232_v1  ;;  %v2480_v4 = vsel %vm2478_vm4, %v2893_v63, %v1232_v1 }
 0x1d3   :  { %2673 = vst [vmem:[#allocation2 + $0x58] sm:$0xff] %v2661_v15  ;;  %v1237_v51 = vsel %vm1230_vm1, %v1233_v61, %v1236_v10  ;;  %v2484_v62 = vsel %vm2477_vm8, %v2480_v4, %v2483_v43 }
 0x1d4   :  { %v1238_v2 = vsel %vm1228_vm7, nan, %v1237_v51  ;;  %v2485_v19 = vsel %vm1228_vm7, nan, %v2484_v62 }
 0x1d5   :  { %v2636_v33 = vmul.f32 %v2908_v52, %v1238_v2  ;;  %v2648_v40 = vmul.f32 %v2623_v59, %v2485_v19 }
 0x1d7   :  { %v2660_v48 = vadd.f32 %v2648_v40, %v2636_v33 }
 0x1d9   :  { %2672 = vst [vmem:[#allocation2 + $0x50] sm:$0xff] %v2660_v48 }
 0x1da   :  { %2920 = shalt.err (!%p2917_p4)
}
 0x1db   :  { %s2940_s8 = smov 128   ;;  %s2941_s9 = smov 8  }
 0x1dc   :  { %2685 = dma.vmem_to_hbm [thread:$0]  %s2680_s4, 1536, %s4155_s3, [#allocation3], %s2940_s8, %s2940_s8, %s2941_s9  }
 0x1dd   :  { %2929 = dma.done.wait [#allocation3], 1536  }
 0x1de   :  { %2930 = vsyncadd [#allocation3], 4294965760 }
 0x1df   :  { %2689 = vsyncpa [#allocation3], 1 }

</bundles_post_ra>
